<compile_context>
chip_gen: v5e
topology: v5e:2x2
jax: 0.10.0
libtpu: 0.0.40
codegen_flags: <defaults>
</compile_context>

<pallas_src>
import functools

import jax
import jax.numpy as jnp
from jax.experimental import pallas as pl
from jax.experimental.pallas import tpu as pltpu

EMBED_DIM = 8                      # embed_dim
OUTPUT_DIM = 7                     # output_dim
CONCAT_FEA_NUM = 2                 # concat_fea_num
INPUT_DIM = 34                     # small stand-in for input_dim=1024
HIDDEN = EMBED_DIM * 4             # 32
IDENT_DIM = INPUT_DIM - CONCAT_FEA_NUM          # 32
IN_DIM = IDENT_DIM + 2 * EMBED_DIM              # 48
NUM_CONVS = 3                      # forward uses convs[0..2]
BN_EPS = 1e-5


def _vmem_specs(n):
    return [pl.BlockSpec(memory_space=pltpu.MemorySpace.VMEM) for _ in range(n)]


# ----------------------------- fused Pallas kernel -------------------------

def fused_forward_kernel(
        # activations / graph structure
        struc_ref, ident_ref, adj_ref, batch_ref,
        # pre_mlp + e_mlp
        wpre_ref, bpre_ref, we_ref, be_ref,
        # GIN layer 0 (split w1: ident part + struc-embedding part)
        w1a0_ref, w1b0_ref, w20_ref, vec0_ref,
        # GIN layer 1
        w11_ref, w21_ref, vec1_ref,
        # GIN layer 2
        w12_ref, w22_ref, vec2_ref,
        # post MLPs
        wp1_ref, bp1_ref, wp2_ref, bp2_ref,
        # output
        out_ref, *, num_graphs):
    f32 = jnp.float32
    bf16 = jnp.bfloat16

    def bf(v):
        return v.astype(bf16)

    # ---- pre_mlp[i](struc[:, i]) -> ReLU -> (implicit concat) -> e_mlp ----
    s = struc_ref[...]                                            # [N, 2] f32
    x0 = jnp.maximum(s[:, 0:1] * wpre_ref[0:1, :] + bpre_ref[0:1, :], 0.0)  # [N, E]
    x1 = jnp.maximum(s[:, 1:2] * wpre_ref[1:2, :] + bpre_ref[1:2, :], 0.0)  # [N, E]
    e = x0.shape[1]
    # concat(x0, x1) @ We  ==  x0 @ We[:E] + x1 @ We[E:]
    x_e = (jnp.dot(x0, we_ref[0:e, :], preferred_element_type=f32)
           + jnp.dot(x1, we_ref[e:, :], preferred_element_type=f32)
           + be_ref[...])                                         # [N, 2E] f32

    ident = ident_ref[...]                                        # [N, Did] f32
    adj = adj_ref[...]                                            # [N, N] bf16

    def gin_mlp(parts, vec_ref, w2_ref):
        """mlp((1+eps)*x + sum_nbr(x)) with eps=0: Linear -> BN(eval) -> ReLU -> Linear.

        `parts` is a list of (z_part_f32, w1_part_bf16_ref); their matmuls are summed,
        which implements a (virtually) concatenated input without materializing it.
        vec_ref rows: [b1; bn_scale; bn_shift; b2], each [1, H] f32.
        """
        b1 = vec_ref[0:1, :]
        scale = vec_ref[1:2, :]
        shift = vec_ref[2:3, :]
        b2 = vec_ref[3:4, :]
        y = b1
        for z_part, w_ref in parts:
            y = y + jnp.dot(bf(z_part), w_ref[...], preferred_element_type=f32)
        y = jnp.maximum(y * scale + shift, 0.0)                   # folded BN + ReLU
        return jnp.dot(bf(y), w2_ref[...], preferred_element_type=f32) + b2

    # ---- GIN layer 0 (input = concat(ident, x_e), never materialized) ----
    z0_i = ident + jnp.dot(adj, bf(ident), preferred_element_type=f32)
    z0_e = x_e + jnp.dot(adj, bf(x_e), preferred_element_type=f32)
    g0 = jnp.maximum(
        gin_mlp([(z0_i, w1a0_ref), (z0_e, w1b0_ref)], vec0_ref, w20_ref), 0.0)

    # ---- GIN layer 1 (+ residual), dropout = identity ----
    z1 = g0 + jnp.dot(adj, bf(g0), preferred_element_type=f32)
    g1 = jnp.maximum(gin_mlp([(z1, w11_ref)], vec1_ref, w21_ref), 0.0) + g0

    # ---- GIN layer 2 (no ReLU before residual), dropout = identity ----
    z2 = g1 + jnp.dot(adj, bf(g1), preferred_element_type=f32)
    g2 = gin_mlp([(z2, w12_ref)], vec2_ref, w22_ref) + g1 + g0    # [N, H] f32

    # ---- global_mean_pool built in-kernel from the batch vector ----
    n = adj.shape[0]
    batch = batch_ref[...]                                        # [1, N] int32
    gids = jax.lax.broadcasted_iota(jnp.int32, (num_graphs, n), 0)
    onehot = (batch == gids).astype(f32)                          # [G, N]
    counts = jnp.maximum(jnp.sum(onehot, axis=1, keepdims=True), 1.0)
    pooled = jnp.dot(bf(onehot), bf(g2), preferred_element_type=f32) / counts  # [G, H]

    # ---- post_mlp1 -> ReLU -> post_mlp2 -> log_softmax ----
    y = jnp.maximum(
        jnp.dot(pooled, wp1_ref[...], preferred_element_type=f32) + bp1_ref[...], 0.0)
    logits = jnp.dot(y, wp2_ref[...], preferred_element_type=f32) + bp2_ref[...]
    m = jnp.max(logits, axis=1, keepdims=True)
    lse = jnp.log(jnp.sum(jnp.exp(logits - m), axis=1, keepdims=True)) + m
    out_ref[...] = logits - lse


# ----------------------------- wrapper ------------------------------------

def strucfea_gnn_forward(x, edge_index, batch, params, *, num_graphs):
    n = x.shape[0]
    ident_vec = x[:, :IDENT_DIM]                                  # [N, Did] f32
    struc_vec = x[:, -CONCAT_FEA_NUM:]                            # [N, 2]   f32

    # Dense adjacency for GIN sum aggregation: A[dst, src] += 1.  Edge counts are
    # small integers -> exact in bf16 (halves the dominant O(N^2) stream).
    # TODO(synk): replace with CSR/edge-list + tiled aggregation at production N.
    src, dst = edge_index[0], edge_index[1]
    adj = jnp.zeros((n, n), jnp.float32).at[dst, src].add(1.0).astype(jnp.bfloat16)

    batch_row = batch.astype(jnp.int32)[None, :]                  # [1, N]

    g = params["gin"]
    inputs = (struc_vec, ident_vec, adj, batch_row,
              params["wpre"], params["bpre"], params["we"], params["be"],
              g[0]["w1a"], g[0]["w1b"], g[0]["w2"], g[0]["vec"],
              g[1]["w1"], g[1]["w2"], g[1]["vec"],
              g[2]["w1"], g[2]["w2"], g[2]["vec"],
              params["wp1"], params["bp1"], params["wp2"], params["bp2"])

    # advisory cost estimate (aggregation matmuls dominate)
    flops = 2 * n * n * (IDENT_DIM + 2 * EMBED_DIM + 2 * HIDDEN)
    flops += 2 * n * (IDENT_DIM * HIDDEN + 2 * EMBED_DIM * HIDDEN
                      + 5 * HIDDEN * HIDDEN + 2 * EMBED_DIM * 2 * EMBED_DIM)
    bytes_accessed = sum(int(a.size) * a.dtype.itemsize for a in inputs)
    bytes_accessed += num_graphs * OUTPUT_DIM * 4
    cost = pl.CostEstimate(flops=int(flops),
                           transcendentals=int(num_graphs * OUTPUT_DIM),
                           bytes_accessed=int(bytes_accessed))

    kernel = functools.partial(fused_forward_kernel, num_graphs=num_graphs)
    return pl.pallas_call(
        kernel,
        out_shape=jax.ShapeDtypeStruct((num_graphs, OUTPUT_DIM), jnp.float32),
        in_specs=_vmem_specs(len(inputs)),
        out_specs=pl.BlockSpec(memory_space=pltpu.MemorySpace.VMEM),
        compiler_params=pltpu.CompilerParams(vmem_limit_bytes=32 * 1024 * 1024),
        cost_estimate=cost,
    )(*inputs)


# ----------------------------- parameters ---------------------------------

def init_params(key):
    ks = iter(jax.random.split(key, 64))

    def nrm(shape, scale=0.1):
        return (scale * jax.random.normal(next(ks), shape)).astype(jnp.float32)

    params = {
        # pre_mlp[i]: Linear(1, E)  -> packed as [2, E] weight rows / bias rows
        "wpre": nrm((CONCAT_FEA_NUM, EMBED_DIM)),
        "bpre": nrm((CONCAT_FEA_NUM, EMBED_DIM)),
        # e_mlp: Linear(2E, 2E), stored pre-transposed ([in, out])
        "we": nrm((2 * EMBED_DIM, 2 * EMBED_DIM)),
        "be": nrm((1, 2 * EMBED_DIM)),
        # post_mlp1: Linear(4E, 2E); post_mlp2: Linear(2E, output_dim)
        "wp1": nrm((HIDDEN, 2 * EMBED_DIM)),
        "bp1": nrm((1, 2 * EMBED_DIM)),
        "wp2": nrm((2 * EMBED_DIM, OUTPUT_DIM)),
        "bp2": nrm((1, OUTPUT_DIM)),
        "gin": [],
    }
    for i in range(NUM_CONVS):
        gamma = nrm((1, HIDDEN)) + 1.0
        beta = nrm((1, HIDDEN))
        run_mean = nrm((1, HIDDEN))
        run_var = jnp.abs(nrm((1, HIDDEN))) + 0.5
        scale = (gamma / jnp.sqrt(run_var + BN_EPS)).astype(jnp.float32)  # fold BN
        shift = (beta - run_mean * scale).astype(jnp.float32)
        b1 = nrm((1, HIDDEN))
        b2 = nrm((1, HIDDEN))
        # pack the per-layer [1, H] vectors: rows = [b1, bn_scale, bn_shift, b2]
        vec = jnp.concatenate([b1, scale, shift, b2], axis=0).astype(jnp.float32)
        layer = {"vec": vec, "w2": nrm((HIDDEN, HIDDEN)).astype(jnp.bfloat16)}
        if i == 0:
            # layer-0 w1 split to avoid materializing concat(ident, x_e)
            layer["w1a"] = nrm((IDENT_DIM, HIDDEN)).astype(jnp.bfloat16)
            layer["w1b"] = nrm((2 * EMBED_DIM, HIDDEN)).astype(jnp.bfloat16)
        else:
            layer["w1"] = nrm((HIDDEN, HIDDEN)).astype(jnp.bfloat16)
        params["gin"].append(layer)
    return params


# ----------------------------- main ----------------------------------------

if __name__ == "__main__":
    key = jax.random.PRNGKey(0)
    k_x, k_e, k_p = jax.random.split(key, 3)

    N = 64                 # nodes
    E = 256                # edges
    G = 4                  # graphs in the batch (test harness assumes N % G == 0)

    x = jax.random.normal(k_x, (N, INPUT_DIM), dtype=jnp.float32)
    edge_index = jax.random.randint(k_e, (2, E), 0, N, dtype=jnp.int32)
    batch = jnp.repeat(jnp.arange(G, dtype=jnp.int32), N // G)

    params = init_params(k_p)

    fwd = jax.jit(functools.partial(strucfea_gnn_forward, num_graphs=G))
    out = jax.block_until_ready(fwd(x, edge_index, batch, params))

    assert out.shape == (G, OUTPUT_DIM)
    assert bool(jnp.all(jnp.isfinite(out)))
    # rows of log_softmax should sum (in prob space) to ~1
    assert bool(jnp.allclose(jnp.sum(jnp.exp(out), axis=1), 1.0, atol=1e-4))
    print("KERNEL_OK")
</pallas_src>

<mosaic_0001>
module attributes {stable_mosaic.version = 11 : i64} {
  func.func @fused_forward_kernel(%arg0: memref<64x2xf32, #tpu.memory_space<vmem>>, %arg1: memref<64x32xf32, #tpu.memory_space<vmem>>, %arg2: memref<64x64xbf16, #tpu.memory_space<vmem>>, %arg3: memref<1x64xi32, #tpu.memory_space<vmem>>, %arg4: memref<2x8xf32, #tpu.memory_space<vmem>>, %arg5: memref<2x8xf32, #tpu.memory_space<vmem>>, %arg6: memref<16x16xf32, #tpu.memory_space<vmem>>, %arg7: memref<1x16xf32, #tpu.memory_space<vmem>>, %arg8: memref<32x32xbf16, #tpu.memory_space<vmem>>, %arg9: memref<16x32xbf16, #tpu.memory_space<vmem>>, %arg10: memref<32x32xbf16, #tpu.memory_space<vmem>>, %arg11: memref<4x32xf32, #tpu.memory_space<vmem>>, %arg12: memref<32x32xbf16, #tpu.memory_space<vmem>>, %arg13: memref<32x32xbf16, #tpu.memory_space<vmem>>, %arg14: memref<4x32xf32, #tpu.memory_space<vmem>>, %arg15: memref<32x32xbf16, #tpu.memory_space<vmem>>, %arg16: memref<32x32xbf16, #tpu.memory_space<vmem>>, %arg17: memref<4x32xf32, #tpu.memory_space<vmem>>, %arg18: memref<32x16xf32, #tpu.memory_space<vmem>>, %arg19: memref<1x16xf32, #tpu.memory_space<vmem>>, %arg20: memref<16x7xf32, #tpu.memory_space<vmem>>, %arg21: memref<1x7xf32, #tpu.memory_space<vmem>>, %arg22: memref<4x7xf32, #tpu.memory_space<vmem>>) attributes {dimension_semantics = [], scalar_prefetch = 0 : i64, scratch_operands = 0 : i64, tpu.core_type = #tpu.core_type<tc>} {
    %c0 = arith.constant 0 : index
    %c0_0 = arith.constant 0 : index
    %0 = vector.load %arg0[%c0, %c0_0] : memref<64x2xf32, #tpu.memory_space<vmem>>, vector<64x2xf32>
    %1 = vector.extract_strided_slice %0 {offsets = [0, 0], sizes = [64, 1], strides = [1, 1]} : vector<64x2xf32> to vector<64x1xf32>
    %c0_1 = arith.constant 0 : index
    %c0_2 = arith.constant 0 : index
    %2 = vector.load %arg4[%c0_1, %c0_2] : memref<2x8xf32, #tpu.memory_space<vmem>>, vector<1x8xf32>
    %3 = vector.broadcast %1 : vector<64x1xf32> to vector<64x8xf32>
    %4 = vector.broadcast %2 : vector<1x8xf32> to vector<64x8xf32>
    %5 = arith.mulf %3, %4 : vector<64x8xf32>
    %c0_3 = arith.constant 0 : index
    %c0_4 = arith.constant 0 : index
    %6 = vector.load %arg5[%c0_3, %c0_4] : memref<2x8xf32, #tpu.memory_space<vmem>>, vector<1x8xf32>
    %7 = vector.broadcast %6 : vector<1x8xf32> to vector<64x8xf32>
    %8 = arith.addf %5, %7 : vector<64x8xf32>
    %cst = arith.constant 0.000000e+00 : f32
    %9 = vector.broadcast %cst : f32 to vector<64x8xf32>
    %10 = arith.maximumf %8, %9 : vector<64x8xf32>
    %11 = vector.extract_strided_slice %0 {offsets = [0, 1], sizes = [64, 1], strides = [1, 1]} : vector<64x2xf32> to vector<64x1xf32>
    %c1 = arith.constant 1 : index
    %c0_5 = arith.constant 0 : index
    %12 = vector.load %arg4[%c1, %c0_5] : memref<2x8xf32, #tpu.memory_space<vmem>>, vector<1x8xf32>
    %13 = vector.broadcast %11 : vector<64x1xf32> to vector<64x8xf32>
    %14 = vector.broadcast %12 : vector<1x8xf32> to vector<64x8xf32>
    %15 = arith.mulf %13, %14 : vector<64x8xf32>
    %c1_6 = arith.constant 1 : index
    %c0_7 = arith.constant 0 : index
    %16 = vector.load %arg5[%c1_6, %c0_7] : memref<2x8xf32, #tpu.memory_space<vmem>>, vector<1x8xf32>
    %17 = vector.broadcast %16 : vector<1x8xf32> to vector<64x8xf32>
    %18 = arith.addf %15, %17 : vector<64x8xf32>
    %cst_8 = arith.constant 0.000000e+00 : f32
    %19 = vector.broadcast %cst_8 : f32 to vector<64x8xf32>
    %20 = arith.maximumf %18, %19 : vector<64x8xf32>
    %c0_9 = arith.constant 0 : index
    %c0_10 = arith.constant 0 : index
    %21 = vector.load %arg6[%c0_9, %c0_10] : memref<16x16xf32, #tpu.memory_space<vmem>>, vector<8x16xf32>
    %cst_11 = arith.constant dense<0.000000e+00> : vector<64x16xf32>
    %22 = tpu.matmul %10, %21, %cst_11 {dimension_numbers = #tpu.dot_dimension_numbers<[1], [0], [0], [1], [0, 0, 1, 1], [], []>} : vector<64x8xf32>, vector<8x16xf32>, vector<64x16xf32> -> vector<64x16xf32>
    %c8 = arith.constant 8 : index
    %c0_12 = arith.constant 0 : index
    %23 = vector.load %arg6[%c8, %c0_12] : memref<16x16xf32, #tpu.memory_space<vmem>>, vector<8x16xf32>
    %cst_13 = arith.constant dense<0.000000e+00> : vector<64x16xf32>
    %24 = tpu.matmul %20, %23, %cst_13 {dimension_numbers = #tpu.dot_dimension_numbers<[1], [0], [0], [1], [0, 0, 1, 1], [], []>} : vector<64x8xf32>, vector<8x16xf32>, vector<64x16xf32> -> vector<64x16xf32>
    %25 = arith.addf %22, %24 : vector<64x16xf32>
    %c0_14 = arith.constant 0 : index
    %c0_15 = arith.constant 0 : index
    %26 = vector.load %arg7[%c0_14, %c0_15] : memref<1x16xf32, #tpu.memory_space<vmem>>, vector<1x16xf32>
    %27 = vector.broadcast %26 : vector<1x16xf32> to vector<64x16xf32>
    %28 = arith.addf %25, %27 : vector<64x16xf32>
    %c0_16 = arith.constant 0 : index
    %c0_17 = arith.constant 0 : index
    %29 = vector.load %arg1[%c0_16, %c0_17] : memref<64x32xf32, #tpu.memory_space<vmem>>, vector<64x32xf32>
    %c0_18 = arith.constant 0 : index
    %c0_19 = arith.constant 0 : index
    %30 = vector.load %arg2[%c0_18, %c0_19] : memref<64x64xbf16, #tpu.memory_space<vmem>>, vector<64x64xbf16>
    %31 = arith.truncf %29 : vector<64x32xf32> to vector<64x32xbf16>
    %cst_20 = arith.constant dense<0.000000e+00> : vector<64x32xf32>
    %32 = tpu.matmul %30, %31, %cst_20 {dimension_numbers = #tpu.dot_dimension_numbers<[1], [0], [0], [1], [0, 0, 1, 1], [], []>} : vector<64x64xbf16>, vector<64x32xbf16>, vector<64x32xf32> -> vector<64x32xf32>
    %33 = arith.addf %29, %32 : vector<64x32xf32>
    %34 = arith.truncf %28 : vector<64x16xf32> to vector<64x16xbf16>
    %cst_21 = arith.constant dense<0.000000e+00> : vector<64x16xf32>
    %35 = tpu.matmul %30, %34, %cst_21 {dimension_numbers = #tpu.dot_dimension_numbers<[1], [0], [0], [1], [0, 0, 1, 1], [], []>} : vector<64x64xbf16>, vector<64x16xbf16>, vector<64x16xf32> -> vector<64x16xf32>
    %36 = arith.addf %28, %35 : vector<64x16xf32>
    %c0_22 = arith.constant 0 : index
    %c0_23 = arith.constant 0 : index
    %37 = vector.load %arg11[%c0_22, %c0_23] : memref<4x32xf32, #tpu.memory_space<vmem>>, vector<1x32xf32>
    %c1_24 = arith.constant 1 : index
    %c0_25 = arith.constant 0 : index
    %38 = vector.load %arg11[%c1_24, %c0_25] : memref<4x32xf32, #tpu.memory_space<vmem>>, vector<1x32xf32>
    %c2 = arith.constant 2 : index
    %c0_26 = arith.constant 0 : index
    %39 = vector.load %arg11[%c2, %c0_26] : memref<4x32xf32, #tpu.memory_space<vmem>>, vector<1x32xf32>
    %c3 = arith.constant 3 : index
    %c0_27 = arith.constant 0 : index
    %40 = vector.load %arg11[%c3, %c0_27] : memref<4x32xf32, #tpu.memory_space<vmem>>, vector<1x32xf32>
    %41 = arith.truncf %33 : vector<64x32xf32> to vector<64x32xbf16>
    %c0_28 = arith.constant 0 : index
    %c0_29 = arith.constant 0 : index
    %42 = vector.load %arg8[%c0_28, %c0_29] : memref<32x32xbf16, #tpu.memory_space<vmem>>, vector<32x32xbf16>
    %cst_30 = arith.constant dense<0.000000e+00> : vector<64x32xf32>
    %43 = tpu.matmul %41, %42, %cst_30 {dimension_numbers = #tpu.dot_dimension_numbers<[1], [0], [0], [1], [0, 0, 1, 1], [], []>} : vector<64x32xbf16>, vector<32x32xbf16>, vector<64x32xf32> -> vector<64x32xf32>
    %44 = vector.broadcast %37 : vector<1x32xf32> to vector<64x32xf32>
    %45 = arith.addf %44, %43 : vector<64x32xf32>
    %46 = arith.truncf %36 : vector<64x16xf32> to vector<64x16xbf16>
    %c0_31 = arith.constant 0 : index
    %c0_32 = arith.constant 0 : index
    %47 = vector.load %arg9[%c0_31, %c0_32] : memref<16x32xbf16, #tpu.memory_space<vmem>>, vector<16x32xbf16>
    %cst_33 = arith.constant dense<0.000000e+00> : vector<64x32xf32>
    %48 = tpu.matmul %46, %47, %cst_33 {dimension_numbers = #tpu.dot_dimension_numbers<[1], [0], [0], [1], [0, 0, 1, 1], [], []>} : vector<64x16xbf16>, vector<16x32xbf16>, vector<64x32xf32> -> vector<64x32xf32>
    %49 = arith.addf %45, %48 : vector<64x32xf32>
    %50 = vector.broadcast %38 : vector<1x32xf32> to vector<64x32xf32>
    %51 = arith.mulf %49, %50 : vector<64x32xf32>
    %52 = vector.broadcast %39 : vector<1x32xf32> to vector<64x32xf32>
    %53 = arith.addf %51, %52 : vector<64x32xf32>
    %cst_34 = arith.constant 0.000000e+00 : f32
    %54 = vector.broadcast %cst_34 : f32 to vector<64x32xf32>
    %55 = arith.maximumf %53, %54 : vector<64x32xf32>
    %56 = arith.truncf %55 : vector<64x32xf32> to vector<64x32xbf16>
    %c0_35 = arith.constant 0 : index
    %c0_36 = arith.constant 0 : index
    %57 = vector.load %arg10[%c0_35, %c0_36] : memref<32x32xbf16, #tpu.memory_space<vmem>>, vector<32x32xbf16>
    %cst_37 = arith.constant dense<0.000000e+00> : vector<64x32xf32>
    %58 = tpu.matmul %56, %57, %cst_37 {dimension_numbers = #tpu.dot_dimension_numbers<[1], [0], [0], [1], [0, 0, 1, 1], [], []>} : vector<64x32xbf16>, vector<32x32xbf16>, vector<64x32xf32> -> vector<64x32xf32>
    %59 = vector.broadcast %40 : vector<1x32xf32> to vector<64x32xf32>
    %60 = arith.addf %58, %59 : vector<64x32xf32>
    %cst_38 = arith.constant 0.000000e+00 : f32
    %61 = vector.broadcast %cst_38 : f32 to vector<64x32xf32>
    %62 = arith.maximumf %60, %61 : vector<64x32xf32>
    %63 = arith.truncf %62 : vector<64x32xf32> to vector<64x32xbf16>
    %cst_39 = arith.constant dense<0.000000e+00> : vector<64x32xf32>
    %64 = tpu.matmul %30, %63, %cst_39 {dimension_numbers = #tpu.dot_dimension_numbers<[1], [0], [0], [1], [0, 0, 1, 1], [], []>} : vector<64x64xbf16>, vector<64x32xbf16>, vector<64x32xf32> -> vector<64x32xf32>
    %65 = arith.addf %62, %64 : vector<64x32xf32>
    %c0_40 = arith.constant 0 : index
    %c0_41 = arith.constant 0 : index
    %66 = vector.load %arg14[%c0_40, %c0_41] : memref<4x32xf32, #tpu.memory_space<vmem>>, vector<1x32xf32>
    %c1_42 = arith.constant 1 : index
    %c0_43 = arith.constant 0 : index
    %67 = vector.load %arg14[%c1_42, %c0_43] : memref<4x32xf32, #tpu.memory_space<vmem>>, vector<1x32xf32>
    %c2_44 = arith.constant 2 : index
    %c0_45 = arith.constant 0 : index
    %68 = vector.load %arg14[%c2_44, %c0_45] : memref<4x32xf32, #tpu.memory_space<vmem>>, vector<1x32xf32>
    %c3_46 = arith.constant 3 : index
    %c0_47 = arith.constant 0 : index
    %69 = vector.load %arg14[%c3_46, %c0_47] : memref<4x32xf32, #tpu.memory_space<vmem>>, vector<1x32xf32>
    %70 = arith.truncf %65 : vector<64x32xf32> to vector<64x32xbf16>
    %c0_48 = arith.constant 0 : index
    %c0_49 = arith.constant 0 : index
    %71 = vector.load %arg12[%c0_48, %c0_49] : memref<32x32xbf16, #tpu.memory_space<vmem>>, vector<32x32xbf16>
    %cst_50 = arith.constant dense<0.000000e+00> : vector<64x32xf32>
    %72 = tpu.matmul %70, %71, %cst_50 {dimension_numbers = #tpu.dot_dimension_numbers<[1], [0], [0], [1], [0, 0, 1, 1], [], []>} : vector<64x32xbf16>, vector<32x32xbf16>, vector<64x32xf32> -> vector<64x32xf32>
    %73 = vector.broadcast %66 : vector<1x32xf32> to vector<64x32xf32>
    %74 = arith.addf %73, %72 : vector<64x32xf32>
    %75 = vector.broadcast %67 : vector<1x32xf32> to vector<64x32xf32>
    %76 = arith.mulf %74, %75 : vector<64x32xf32>
    %77 = vector.broadcast %68 : vector<1x32xf32> to vector<64x32xf32>
    %78 = arith.addf %76, %77 : vector<64x32xf32>
    %cst_51 = arith.constant 0.000000e+00 : f32
    %79 = vector.broadcast %cst_51 : f32 to vector<64x32xf32>
    %80 = arith.maximumf %78, %79 : vector<64x32xf32>
    %81 = arith.truncf %80 : vector<64x32xf32> to vector<64x32xbf16>
    %c0_52 = arith.constant 0 : index
    %c0_53 = arith.constant 0 : index
    %82 = vector.load %arg13[%c0_52, %c0_53] : memref<32x32xbf16, #tpu.memory_space<vmem>>, vector<32x32xbf16>
    %cst_54 = arith.constant dense<0.000000e+00> : vector<64x32xf32>
    %83 = tpu.matmul %81, %82, %cst_54 {dimension_numbers = #tpu.dot_dimension_numbers<[1], [0], [0], [1], [0, 0, 1, 1], [], []>} : vector<64x32xbf16>, vector<32x32xbf16>, vector<64x32xf32> -> vector<64x32xf32>
    %84 = vector.broadcast %69 : vector<1x32xf32> to vector<64x32xf32>
    %85 = arith.addf %83, %84 : vector<64x32xf32>
    %cst_55 = arith.constant 0.000000e+00 : f32
    %86 = vector.broadcast %cst_55 : f32 to vector<64x32xf32>
    %87 = arith.maximumf %85, %86 : vector<64x32xf32>
    %88 = arith.addf %87, %62 : vector<64x32xf32>
    %89 = arith.truncf %88 : vector<64x32xf32> to vector<64x32xbf16>
    %cst_56 = arith.constant dense<0.000000e+00> : vector<64x32xf32>
    %90 = tpu.matmul %30, %89, %cst_56 {dimension_numbers = #tpu.dot_dimension_numbers<[1], [0], [0], [1], [0, 0, 1, 1], [], []>} : vector<64x64xbf16>, vector<64x32xbf16>, vector<64x32xf32> -> vector<64x32xf32>
    %91 = arith.addf %88, %90 : vector<64x32xf32>
    %c0_57 = arith.constant 0 : index
    %c0_58 = arith.constant 0 : index
    %92 = vector.load %arg17[%c0_57, %c0_58] : memref<4x32xf32, #tpu.memory_space<vmem>>, vector<1x32xf32>
    %c1_59 = arith.constant 1 : index
    %c0_60 = arith.constant 0 : index
    %93 = vector.load %arg17[%c1_59, %c0_60] : memref<4x32xf32, #tpu.memory_space<vmem>>, vector<1x32xf32>
    %c2_61 = arith.constant 2 : index
    %c0_62 = arith.constant 0 : index
    %94 = vector.load %arg17[%c2_61, %c0_62] : memref<4x32xf32, #tpu.memory_space<vmem>>, vector<1x32xf32>
    %c3_63 = arith.constant 3 : index
    %c0_64 = arith.constant 0 : index
    %95 = vector.load %arg17[%c3_63, %c0_64] : memref<4x32xf32, #tpu.memory_space<vmem>>, vector<1x32xf32>
    %96 = arith.truncf %91 : vector<64x32xf32> to vector<64x32xbf16>
    %c0_65 = arith.constant 0 : index
    %c0_66 = arith.constant 0 : index
    %97 = vector.load %arg15[%c0_65, %c0_66] : memref<32x32xbf16, #tpu.memory_space<vmem>>, vector<32x32xbf16>
    %cst_67 = arith.constant dense<0.000000e+00> : vector<64x32xf32>
    %98 = tpu.matmul %96, %97, %cst_67 {dimension_numbers = #tpu.dot_dimension_numbers<[1], [0], [0], [1], [0, 0, 1, 1], [], []>} : vector<64x32xbf16>, vector<32x32xbf16>, vector<64x32xf32> -> vector<64x32xf32>
    %99 = vector.broadcast %92 : vector<1x32xf32> to vector<64x32xf32>
    %100 = arith.addf %99, %98 : vector<64x32xf32>
    %101 = vector.broadcast %93 : vector<1x32xf32> to vector<64x32xf32>
    %102 = arith.mulf %100, %101 : vector<64x32xf32>
    %103 = vector.broadcast %94 : vector<1x32xf32> to vector<64x32xf32>
    %104 = arith.addf %102, %103 : vector<64x32xf32>
    %cst_68 = arith.constant 0.000000e+00 : f32
    %105 = vector.broadcast %cst_68 : f32 to vector<64x32xf32>
    %106 = arith.maximumf %104, %105 : vector<64x32xf32>
    %107 = arith.truncf %106 : vector<64x32xf32> to vector<64x32xbf16>
    %c0_69 = arith.constant 0 : index
    %c0_70 = arith.constant 0 : index
    %108 = vector.load %arg16[%c0_69, %c0_70] : memref<32x32xbf16, #tpu.memory_space<vmem>>, vector<32x32xbf16>
    %cst_71 = arith.constant dense<0.000000e+00> : vector<64x32xf32>
    %109 = tpu.matmul %107, %108, %cst_71 {dimension_numbers = #tpu.dot_dimension_numbers<[1], [0], [0], [1], [0, 0, 1, 1], [], []>} : vector<64x32xbf16>, vector<32x32xbf16>, vector<64x32xf32> -> vector<64x32xf32>
    %110 = vector.broadcast %95 : vector<1x32xf32> to vector<64x32xf32>
    %111 = arith.addf %109, %110 : vector<64x32xf32>
    %112 = arith.addf %111, %88 : vector<64x32xf32>
    %113 = arith.addf %112, %62 : vector<64x32xf32>
    %c0_72 = arith.constant 0 : index
    %c0_73 = arith.constant 0 : index
    %114 = vector.load %arg3[%c0_72, %c0_73] : memref<1x64xi32, #tpu.memory_space<vmem>>, vector<1x64xi32>
    %115 = tpu.iota {dimensions = array<i32: 0>} : vector<4x64xi32>
    %116 = vector.broadcast %114 : vector<1x64xi32> to vector<4x64xi32>
    %117 = arith.cmpi eq, %116, %115 : vector<4x64xi32>
    %118 = arith.extui %117 : vector<4x64xi1> to vector<4x64xi32>
    %119 = arith.sitofp %118 : vector<4x64xi32> to vector<4x64xf32>
    %cst_74 = arith.constant dense<0.000000e+00> : vector<4xf32>
    %120 = vector.multi_reduction <add>, %119, %cst_74 [1] : vector<4x64xf32> to vector<4xf32>
    %121 = vector.shape_cast %120 : vector<4xf32> to vector<4x1xf32>
    %cst_75 = arith.constant 1.000000e+00 : f32
    %122 = vector.broadcast %cst_75 : f32 to vector<4x1xf32>
    %123 = arith.maximumf %121, %122 : vector<4x1xf32>
    %124 = arith.truncf %119 : vector<4x64xf32> to vector<4x64xbf16>
    %125 = arith.truncf %113 : vector<64x32xf32> to vector<64x32xbf16>
    %cst_76 = arith.constant dense<0.000000e+00> : vector<4x32xf32>
    %126 = tpu.matmul %124, %125, %cst_76 {dimension_numbers = #tpu.dot_dimension_numbers<[1], [0], [0], [1], [0, 0, 1, 1], [], []>} : vector<4x64xbf16>, vector<64x32xbf16>, vector<4x32xf32> -> vector<4x32xf32>
    %127 = vector.broadcast %123 : vector<4x1xf32> to vector<4x32xf32>
    %128 = arith.divf %126, %127 : vector<4x32xf32>
    %c0_77 = arith.constant 0 : index
    %c0_78 = arith.constant 0 : index
    %129 = vector.load %arg18[%c0_77, %c0_78] : memref<32x16xf32, #tpu.memory_space<vmem>>, vector<32x16xf32>
    %cst_79 = arith.constant dense<0.000000e+00> : vector<4x16xf32>
    %130 = tpu.matmul %128, %129, %cst_79 {dimension_numbers = #tpu.dot_dimension_numbers<[1], [0], [0], [1], [0, 0, 1, 1], [], []>} : vector<4x32xf32>, vector<32x16xf32>, vector<4x16xf32> -> vector<4x16xf32>
    %c0_80 = arith.constant 0 : index
    %c0_81 = arith.constant 0 : index
    %131 = vector.load %arg19[%c0_80, %c0_81] : memref<1x16xf32, #tpu.memory_space<vmem>>, vector<1x16xf32>
    %132 = vector.broadcast %131 : vector<1x16xf32> to vector<4x16xf32>
    %133 = arith.addf %130, %132 : vector<4x16xf32>
    %cst_82 = arith.constant 0.000000e+00 : f32
    %134 = vector.broadcast %cst_82 : f32 to vector<4x16xf32>
    %135 = arith.maximumf %133, %134 : vector<4x16xf32>
    %c0_83 = arith.constant 0 : index
    %c0_84 = arith.constant 0 : index
    %136 = vector.load %arg20[%c0_83, %c0_84] : memref<16x7xf32, #tpu.memory_space<vmem>>, vector<16x7xf32>
    %cst_85 = arith.constant dense<0.000000e+00> : vector<4x7xf32>
    %137 = tpu.matmul %135, %136, %cst_85 {dimension_numbers = #tpu.dot_dimension_numbers<[1], [0], [0], [1], [0, 0, 1, 1], [], []>} : vector<4x16xf32>, vector<16x7xf32>, vector<4x7xf32> -> vector<4x7xf32>
    %c0_86 = arith.constant 0 : index
    %c0_87 = arith.constant 0 : index
    %138 = vector.load %arg21[%c0_86, %c0_87] : memref<1x7xf32, #tpu.memory_space<vmem>>, vector<1x7xf32>
    %139 = vector.broadcast %138 : vector<1x7xf32> to vector<4x7xf32>
    %140 = arith.addf %137, %139 : vector<4x7xf32>
    %cst_88 = arith.constant dense<0xFF800000> : vector<4xf32>
    %141 = vector.multi_reduction <maximumf>, %140, %cst_88 [1] : vector<4x7xf32> to vector<4xf32>
    %142 = vector.shape_cast %141 : vector<4xf32> to vector<4x1xf32>
    %143 = vector.broadcast %142 : vector<4x1xf32> to vector<4x7xf32>
    %144 = arith.subf %140, %143 : vector<4x7xf32>
    %145 = math.exp %144 : vector<4x7xf32>
    %cst_89 = arith.constant dense<0.000000e+00> : vector<4xf32>
    %146 = vector.multi_reduction <add>, %145, %cst_89 [1] : vector<4x7xf32> to vector<4xf32>
    %147 = vector.shape_cast %146 : vector<4xf32> to vector<4x1xf32>
    %148 = math.log %147 : vector<4x1xf32>
    %149 = arith.addf %148, %142 : vector<4x1xf32>
    %150 = vector.broadcast %149 : vector<4x1xf32> to vector<4x7xf32>
    %151 = arith.subf %140, %150 : vector<4x7xf32>
    %c0_90 = arith.constant 0 : index
    %c0_91 = arith.constant 0 : index
    %152 = vector.load %arg22[%c0_90, %c0_91] : memref<4x7xf32, #tpu.memory_space<vmem>>, vector<4x7xf32>
    tpu.vector_store %arg22[%c0_90, %c0_91], %151 {strides = array<i32>} : memref<4x7xf32, #tpu.memory_space<vmem>>, vector<4x7xf32>,
    return
  }
}

</mosaic_0001>

<bundles_post_ra>
// kernel: strucfea_gnn_forward.1
= control target key start
LH: loop header
LB: loop body
LE: loop exit
PB: predicated region body
PF: predicated region fallthrough
CT: control target
= control target key end

     0   :  { %s2075_s0 = inlined_call_operand.vmem [shape: f32[64,2], index: 0, kind: input, shape index: {}]   ;;  %s2076_s1 = inlined_call_operand.vmem [shape: f32[64,32], index: 1, kind: input, shape index: {}]   ;;  %s2077_s2 = inlined_call_operand.vmem [shape: bf16[64,64], index: 2, kind: input, shape index: {}]   ;;  %s2078_s3 = inlined_call_operand.vmem [shape: s32[1,64], index: 3, kind: input, shape index: {}]   ;;  %s2079_s4 = inlined_call_operand.vmem [shape: f32[2,8], index: 4, kind: input, shape index: {}]   ;;  %s2080_s5 = inlined_call_operand.vmem [shape: f32[2,8], index: 5, kind: input, shape index: {}]   ;;  %s2081_s6 = inlined_call_operand.vmem [shape: f32[16,16], index: 6, kind: input, shape index: {}]   ;;  %s2082_s7 = inlined_call_operand.vmem [shape: f32[1,16], index: 7, kind: input, shape index: {}]   ;;  %s2083_s8 = inlined_call_operand.vmem [shape: bf16[32,32], index: 8, kind: input, shape index: {}]   ;;  %s2084_s9 = inlined_call_operand.vmem [shape: bf16[16,32], index: 9, kind: input, shape index: {}]   ;;  %s2085_s10 = inlined_call_operand.vmem [shape: bf16[32,32], index: 10, kind: input, shape index: {}]   ;;  %s2086_s11 = inlined_call_operand.vmem [shape: f32[4,32], index: 11, kind: input, shape index: {}]   ;;  %s2087_s12 = inlined_call_operand.vmem [shape: bf16[32,32], index: 12, kind: input, shape index: {}]   ;;  %s2088_s13 = inlined_call_operand.vmem [shape: bf16[32,32], index: 13, kind: input, shape index: {}]   ;;  %s2089_s14 = inlined_call_operand.vmem [shape: f32[4,32], index: 14, kind: input, shape index: {}]   ;;  %s2090_s15 = inlined_call_operand.vmem [shape: bf16[32,32], index: 15, kind: input, shape index: {}]   ;;  %s2091_s16 = inlined_call_operand.vmem [shape: bf16[32,32], index: 16, kind: input, shape index: {}]   ;;  %s2092_s17 = inlined_call_operand.vmem [shape: f32[4,32], index: 17, kind: input, shape index: {}]   ;;  %s2093_s18 = inlined_call_operand.vmem [shape: f32[32,16], index: 18, kind: input, shape index: {}]   ;;  %s2094_s19 = inlined_call_operand.vmem [shape: f32[1,16], index: 19, kind: input, shape index: {}]   ;;  %s2095_s20 = inlined_call_operand.vmem [shape: f32[16,7], index: 20, kind: input, shape index: {}]   ;;  %s2096_s21 = inlined_call_operand.vmem [shape: f32[1,7], index: 21, kind: input, shape index: {}]   ;;  %s2097_s22 = inlined_call_operand.hbm [shape: f32[4,7], index: 22, kind: output, shape index: {}]  }
   0x1   :  { %2104 = sst [smem:[#allocation5_spill]] %s2075_s0 }
   0x2   :  { %2105 = sst [smem:[#allocation6_spill]] %s2076_s1 }
   0x3   :  { %2106 = sst [smem:[#allocation7_spill]] %s2077_s2 }
   0x4   :  { %2107 = sst [smem:[#allocation8_spill]] %s2078_s3 }
   0x5   :  { %2108 = sst [smem:[#allocation9_spill]] %s2079_s4 }
   0x6   :  { %2109 = sst [smem:[#allocation10_spill]] %s2080_s5 }
   0x7   :  { %2110 = sst [smem:[#allocation11_spill]] %s2081_s6 }
   0x8   :  { %s2111_s29 = sld [smem:[#allocation5_spill]]  ;;  %v1512_v2 = vmov 1   ;;  %v1513_v3 = vmov 0  }
   0x9   :  { %1451 = vset.pattern.permute.xlu0 %v1512_v2  ;;  %1453 = vset.pattern.permute.xlu1 %v1513_v3 }
   0xa   :  { %1454 = vset.pattern.permute.xlu2 %v1513_v3 }
   0xe   :  { %v77_v0 = vld [vmem:[%s2111_s29 + $0x20] sm:$0xff]  ;;  %v74_v1 = vld [vmem:[%s2111_s29 + $0x8] sm:$0xff]  ;;  %v76_v4 = vld [vmem:[%s2111_s29 + $0x18] sm:$0xff] }
   0xf   :  { %167 = vperm.xlu0 %1451, %v77_v0   ;;  %89 = vperm.xlu1 %1453, %v74_v1   ;;  %v75_v5 = vld [vmem:[%s2111_s29 + $0x10] sm:$0xff]  ;;  %v73_v6 = vld [vmem:[%s2111_s29] sm:$0xff] }
  0x10   :  { %99 = vperm.xlu2 %1454, %v76_v4  }
  0x11   :  { %27 = vsyncpa [#allocation3], 0  ;;  %v78_v7 = vld [vmem:[%s2111_s29 + $0x28] sm:$0xff]  ;;  %v79_v8 = vld [vmem:[%s2111_s29 + $0x30] sm:$0xff]  ;;  %s2112_s0 = sld [smem:[#allocation11_spill]]  ;;  %vm211_vm0 = vcmask 64512  }
  0x12   :  { %v80_v9 = vld [vmem:[%s2111_s29 + $0x38] sm:$0xff]  ;;  %s2113_s24 = sld [smem:[#allocation9_spill]]  ;;  %vm394_vm1 = vcmask 523264   ;;  %vm509_vm2 = vcmask 261120   ;;  %vm572_vm3 = vcmask 130048   ;;  %vm1163_vm5 = vcmask 519168  }
  0x13   :  { %s2114_s26 = sld [smem:[#allocation10_spill]]  ;;  %vm1265_vm10 = vcmask 52224   ;;  %s1287_s2 = sshll.u32 %s2097_s22, 4  ;;  %s1288_s2 = int_to_ptr.hbm [resolvable:$true] %s1287_s2 }
  0x14   :  { %s2116_s29 = sld [smem:[#allocation7_spill]] }
  0x15   :  { %s2117_s4 = sld [smem:[#allocation8_spill]] }
  0x17   :  { %1452 = vset.pattern.permute.xlu0 %v1513_v3  ;;  %94 = vperm.xlu1 %1453, %v75_v5   ;;  %v210_v10 = vld [vmem:[%s2112_s0 + $0x8] sm:$0xff]  ;;  %v209_v11 = vld [vmem:[%s2112_s0] sm:$0xff]  ;;  %s2115_s0 = sld [smem:[#allocation6_spill]] }
  0x18   :  { %84 = vperm.xlu0 %1452, %v73_v6   ;;  %104 = vperm.xlu2 %1454, %v77_v0   ;;  %v1664_v13 = vld [vmem:[%s2113_s24 + $0x1] ss:$0 sm:$0xff]  ;;  %v1676_v21 = vld [vmem:[%s2113_s24] ss:$0 sm:$0xff] }
  0x19   :  { %1445 = vmatpush.msra.mxu1 %v210_v10  ;;  %251 = vmatpush.msra.mxu0 %v210_v10  ;;  %v1669_v14 = vld [vmem:[%s2114_s26 + $0x1] ss:$0 sm:$0xff]  ;;  %v1682_v22 = vld [vmem:[%s2114_s26] ss:$0 sm:$0xff] }
  0x1a   :  { %1446 = vmatpush.msra.mxu2 %v210_v10 }
  0x1b   :  { %316 = vmatpush.msrb.mxu1 %v209_v11 }
  0x1f   :  { %1455 = vset.pattern.permute.xlu1 %v1512_v2 }
  0x20   :  { %171 = vperm.xlu1 %1455, %v78_v7   ;;  %1456 = vset.pattern.permute.xlu0 %v1512_v2 }
  0x21   :  { %151 = vperm.xlu0 %1456, %v73_v6   ;;  %109 = vperm.xlu2 %1454, %v78_v7  }
  0x28   :  { %175 = vperm.xlu1 %1455, %v79_v8  }
  0x29   :  { %114 = vperm.xlu2 %1454, %v79_v8   ;;  %1458 = vset.pattern.permute.xlu0 %v1513_v3 }
  0x2a   :  { %119 = vperm.xlu0 %1458, %v80_v9  }
  0x30   :  { %155 = vperm.xlu1 %1455, %v74_v1  }
  0x31   :  { %1457 = vset.pattern.permute.xlu2 %v1512_v2 }
  0x32   :  { %179 = vperm.xlu2 %1457, %v80_v9   ;;  %1459 = vset.pattern.permute.xlu0 %v1512_v2 }
  0x38   :  { %159 = vperm.xlu1 %1455, %v75_v5  }
  0x3a   :  { %163 = vperm.xlu2 %1457, %v76_v4  }
  0x6a   :  { %v100_v12 = vpop.permute.xlu2 %99 }
  0x6b   :  { %v126_v48 = vmul.f32 %v1676_v21, %v100_v12 }
  0x6d   :  { %v136_v53 = vadd.f32 %v1682_v22, %v126_v48 }
  0x6f   :  { %v144_v57 = vmax.f32 %v136_v53, 0.0 }
  0x72   :  { %v105_v15 = vpop.permute.xlu2 %104 }
  0x73   :  { %v127_v58 = vmul.f32 %v1676_v21, %v105_v15 }
  0x75   :  { %v137_v62 = vadd.f32 %v1682_v22, %v127_v58 }
  0x77   :  { %v145_v2 = vmax.f32 %v137_v62, 0.0 }
  0x7b   :  { %v110_v26 = vpop.permute.xlu2 %109 }
  0x7c   :  { %v128_v3 = vmul.f32 %v1676_v21, %v110_v26  ;;  %v1756_v26 = vld [vmem:[%s2115_s0 + $0x10] sm:$0xff] }
  0x7e   :  { %v138_v6 = vadd.f32 %v1682_v22, %v128_v3  ;;  %v1810_v3 = vld [vmem:[%s2116_s29 + $0x18] sm:$0xff] }
  0x80   :  { %v146_v8 = vmax.f32 %v138_v6, 0.0  ;;  %v1432_v6 = vld [vmem:[%s2083_s8] sm:$0xff] }
  0x81   :  { %v168_v16 = vpop.permute.xlu0 %167  ;;  %v90_v17 = vpop.permute.xlu1 %89 }
  0x82   :  { %v187_v18 = vmul.f32 %v1664_v13, %v168_v16  ;;  %v124_v27 = vmul.f32 %v1676_v21, %v90_v17 }
  0x83   :  { %v115_v37 = vpop.permute.xlu2 %114 }
  0x84   :  { %v197_v19 = vadd.f32 %v1669_v14, %v187_v18  ;;  %v134_v30 = vadd.f32 %v1682_v22, %v124_v27  ;;  %v129_v9 = vmul.f32 %v1676_v21, %v115_v37  ;;  %v1761_v27 = vld [vmem:[%s2115_s0 + $0x18] sm:$0xff] }
  0x86   :  { %v205_v20 = vmax.f32 %v197_v19, 0.0  ;;  %v142_v35 = vmax.f32 %v134_v30, 0.0  ;;  %v139_v11 = vadd.f32 %v1682_v22, %v129_v9  ;;  %v1732_v19 = vld [vmem:[%s2115_s0 + $0x30] sm:$0xff]  ;;  %v355_v30 = vld [vmem:[%s2115_s0 + $0x8] sm:$0xff] }
  0x88   :  { %1300 = vmatmul.msk.f32.vlgmr.msra.gmra.mxu1 %vm211_vm0, %v205_v20  ;;  %v1737_v20 = vld [vmem:[%s2115_s0 + $0x38] sm:$0xff] }
  0x89   :  { %v95_v23 = vpop.permute.xlu1 %94 }
  0x8a   :  { %v85_v24 = vpop.permute.xlu0 %84  ;;  %v125_v39 = vmul.f32 %v1676_v21, %v95_v23  ;;  %v1749_v23 = vld [vmem:[%s2115_s0 + $0x28] sm:$0xff] }
  0x8b   :  { %v123_v25 = vmul.f32 %v1676_v21, %v85_v24 }
  0x8c   :  { %v135_v43 = vadd.f32 %v1682_v22, %v125_v39  ;;  %v180_v46 = vpop.permute.xlu2 %179  ;;  %v1781_v39 = vld [vmem:[%s2116_s29 + $0x8] sm:$0xff] }
  0x8d   :  { %v133_v28 = vadd.f32 %v1682_v22, %v123_v25  ;;  %v190_v47 = vmul.f32 %v1664_v13, %v180_v46  ;;  %v1788_v46 = vld [vmem:[%s2116_s29 + $0x10] sm:$0xff] }
  0x8e   :  { %v143_v49 = vmax.f32 %v135_v43, 0.0 }
  0x8f   :  { %v141_v29 = vmax.f32 %v133_v28, 0.0  ;;  %v200_v52 = vadd.f32 %v1669_v14, %v190_v47  ;;  %v371_v28 = vpack.c.bf16 %v1761_v27, %v1756_v26  ;;  %v1464_v47 = vld [vmem:[%s2082_s7] ss:$0 sm:$0xff] }
  0x91   :  { %1304 = vmatmul.msk.f32.vlgmr.msrb.gmra.mxu1 %vm211_vm0, %v141_v29  ;;  %v208_v56 = vmax.f32 %v200_v52, 0.0  ;;  %v354_v29 = vld [vmem:[%s2115_s0] sm:$0xff] }
  0x92   :  { %v172_v31 = vpop.permute.xlu1 %171 }
  0x93   :  { %v188_v32 = vmul.f32 %v1664_v13, %v172_v31  ;;  %v152_v33 = vpop.permute.xlu0 %151  ;;  %v370_v31 = vpack.c.bf16 %v355_v30, %v354_v29 }
  0x94   :  { %v183_v34 = vmul.f32 %v1664_v13, %v152_v33  ;;  %v164_v61 = vpop.permute.xlu2 %163  ;;  %v1774_v33 = vld [vmem:[%s2116_s29] sm:$0xff] }
  0x95   :  { %v198_v36 = vadd.f32 %v1669_v14, %v188_v32  ;;  %v186_v1 = vmul.f32 %v1664_v13, %v164_v61 }
  0x96   :  { %v193_v38 = vadd.f32 %v1669_v14, %v183_v34 }
  0x97   :  { %v206_v40 = vmax.f32 %v198_v36, 0.0  ;;  %v196_v5 = vadd.f32 %v1669_v14, %v186_v1 }
  0x98   :  { %v201_v41 = vmax.f32 %v193_v38, 0.0 }
  0x99   :  { %1305 = vmatmul.msk.f32.gmra.mxu1 %vm211_vm0, %v142_v35  ;;  %1301 = vmatmul.msk.f32.vlgmr.msra.gmra.mxu2 %vm211_vm0, %v206_v40  ;;  %v204_v7 = vmax.f32 %v196_v5, 0.0  ;;  %v1433_v5 = vld [vmem:[%s2083_s8 + $0x8] sm:$0xff] }
  0x9a   :  { %v176_v42 = vpop.permute.xlu1 %175  ;;  %1296 = vmatmul.msk.f32.vlgmr.msra.gmra.mxu0 %vm211_vm0, %v201_v41 }
  0x9b   :  { %v189_v44 = vmul.f32 %v1664_v13, %v176_v42  ;;  %528 = vmatpush.bf16.msrb.mxu0 %v1433_v5 }
  0x9c   :  { %v120_v10 = vpop.permute.xlu0 %119 }
  0x9d   :  { %v199_v45 = vadd.f32 %v1669_v14, %v189_v44  ;;  %v130_v12 = vmul.f32 %v1676_v21, %v120_v10  ;;  %v373_v21 = vpack.c.bf16 %v1737_v20, %v1732_v19 }
  0x9f   :  { %v207_v50 = vmax.f32 %v199_v45, 0.0  ;;  %411 = vmatpush.bf16.msrb.mxu2 %v373_v21  ;;  %529 = vmatpush.bf16.msrb.mxu0 %v1432_v6 }
  0xa1   :  { %1306 = vmatmul.msk.f32.gmra.mxu1 %vm211_vm0, %v143_v49  ;;  %1302 = vmatmul.msk.f32.gmra.mxu2 %vm211_vm0, %v207_v50 }
  0xa2   :  { %v156_v51 = vpop.permute.xlu1 %155 }
  0xa3   :  { %v184_v54 = vmul.f32 %v1664_v13, %v156_v51 }
  0xa5   :  { %v194_v55 = vadd.f32 %v1669_v14, %v184_v54 }
  0xa7   :  { %v202_v59 = vmax.f32 %v194_v55, 0.0 }
  0xa9   :  { %1297 = vmatmul.msk.f32.gmra.mxu0 %vm211_vm0, %v202_v59  ;;  %1307 = vmatmul.msk.f32.gmra.mxu1 %vm211_vm0, %v144_v57 }
  0xaa   :  { %v160_v60 = vpop.permute.xlu1 %159  ;;  %1303 = vmatmul.msk.f32.gmra.mxu2 %vm211_vm0, %v208_v56 }
  0xab   :  { %v185_v63 = vmul.f32 %v1664_v13, %v160_v60  ;;  %v147_v13 = vmax.f32 %v139_v11, 0.0 }
  0xad   :  { %v195_v0 = vadd.f32 %v1669_v14, %v185_v63  ;;  %v140_v14 = vadd.f32 %v1682_v22, %v130_v12  ;;  %v1744_v22 = vld [vmem:[%s2115_s0 + $0x20] sm:$0xff] }
  0xae   :  { %v372_v24 = vpack.c.bf16 %v1749_v23, %v1744_v22 }
  0xaf   :  { %v203_v4 = vmax.f32 %v195_v0, 0.0  ;;  %v148_v15 = vmax.f32 %v140_v14, 0.0 }
  0xb0   :  { %412 = vmatpush.bf16.msrb.mxu2 %v372_v24 }
  0xb1   :  { %1298 = vmatmul.msk.f32.gmra.mxu0 %vm211_vm0, %v203_v4  ;;  %1308 = vmatmul.msk.f32.gmra.mxu1 %vm211_vm0, %v145_v2 }
  0xb4   :  { %413 = vmatpush.bf16.msrb.mxu2 %v371_v28 }
  0xb8   :  { %414 = vmatpush.bf16.msrb.mxu2 %v370_v31 }
  0xb9   :  { %1299 = vmatmul.msk.f32.gmra.mxu0 %vm211_vm0, %v204_v7  ;;  %1309 = vmatmul.msk.f32.gmra.mxu1 %vm211_vm0, %v146_v8  ;;  %v1434_v7 = vld [vmem:[%s2084_s9] sm:$0xff] }
  0xba   :  { %592 = vmatpush.bf16.msra.mxu1 %v1434_v7 }
  0xbb   :  { %1328 = vmatmul.msk.bf16.vlgmr.msrb.gmra.mxu2 %vm394_vm1, %v1774_v33 }
  0xc1   :  { %1310 = vmatmul.msk.f32.gmra.mxu1 %vm211_vm0, %v147_v13 }
  0xc9   :  { %1311 = vmatmul.msk.f32.gmra.mxu1 %vm211_vm0, %v148_v15 }
  0xcb   :  { %1329 = vmatmul.msk.bf16.gmra.mxu2 %vm394_vm1, %v1781_v39 }
  0xdb   :  { %1330 = vmatmul.msk.bf16.gmra.mxu2 %vm394_vm1, %v1788_v46 }
  0xeb   :  { %1331 = vmatmul.msk.bf16.gmra.mxu2 %vm394_vm1, %v1810_v3 }
 0x105   :  { %v265_v16 = vpop.f32.mrf.mxu1 }
 0x10e   :  { %v318_v17 = vpop.f32.mrf.mxu1 }
 0x116   :  { %v321_v18 = vpop.f32.mrf.mxu1 }
 0x117   :  { %v253_v34 = vpop.f32.mrf.mxu0 }
 0x118   :  { %v319_v62 = vadd.f32 %v318_v17, %v253_v34 }
 0x11a   :  { %v346_v2 = vadd.f32 %v1464_v47, %v319_v62 }
 0x11c   :  { %v268_v36 = vpop.f32.mrf.mxu2 }
 0x11e   :  { %v324_v25 = vpop.f32.mrf.mxu1 }
 0x124   :  { %v271_v40 = vpop.f32.mrf.mxu2 }
 0x126   :  { %v327_v32 = vpop.f32.mrf.mxu1  ;;  %v256_v37 = vpop.f32.mrf.mxu0 }
 0x127   :  { %v322_v59 = vadd.f32 %v321_v18, %v256_v37 }
 0x129   :  { %v347_v1 = vadd.f32 %v1464_v47, %v322_v59 }
 0x12b   :  { %v444_v4 = vpack.c.bf16 %v347_v1, %v346_v2 }
 0x12d   :  { %v274_v43 = vpop.f32.mrf.mxu2 }
 0x12e   :  { %v330_v35 = vpop.f32.mrf.mxu1  ;;  %v259_v41 = vpop.f32.mrf.mxu0 }
 0x12f   :  { %v331_v51 = vadd.f32 %v330_v35, %v265_v16  ;;  %v325_v57 = vadd.f32 %v324_v25, %v259_v41 }
 0x131   :  { %v1803_v58 = vadd.f32 %v1464_v47, %v331_v51  ;;  %v348_v63 = vadd.f32 %v1464_v47, %v325_v57  ;;  %v1436_v51 = vld [vmem:[%s2085_s10 + $0x8] sm:$0xff] }
 0x132   :  { %687 = vmatpush.bf16.msra.mxu2 %v1436_v51 }
 0x136   :  { %v333_v38 = vpop.f32.mrf.mxu1  ;;  %v262_v50 = vpop.f32.mrf.mxu0 }
 0x137   :  { %v334_v48 = vadd.f32 %v333_v38, %v268_v36  ;;  %v328_v54 = vadd.f32 %v327_v32, %v262_v50 }
 0x139   :  { %v1799_v55 = vadd.f32 %v1464_v47, %v334_v48  ;;  %v349_v61 = vadd.f32 %v1464_v47, %v328_v54 }
 0x13b   :  { %v446_v60 = vpack.c.bf16 %v1799_v55, %v1803_v58  ;;  %v445_v0 = vpack.c.bf16 %v349_v61, %v348_v63 }
 0x13e   :  { %v336_v42 = vpop.f32.mrf.mxu1  ;;  %v416_v8 = vpop.f32.mrf.mxu2 }
 0x13f   :  { %v337_v44 = vadd.f32 %v336_v42, %v271_v40  ;;  %v436_v9 = vadd.f32 %v416_v8, %v354_v29 }
 0x141   :  { %v1793_v52 = vadd.f32 %v1464_v47, %v337_v44 }
 0x146   :  { %v339_v45 = vpop.f32.mrf.mxu1  ;;  %v418_v10 = vpop.f32.mrf.mxu2 }
 0x147   :  { %v340_v49 = vadd.f32 %v339_v45, %v274_v43  ;;  %v437_v11 = vadd.f32 %v418_v10, %v355_v30 }
 0x149   :  { %v1795_v53 = vadd.f32 %v1464_v47, %v340_v49  ;;  %v489_v12 = vpack.c.bf16 %v437_v11, %v436_v9 }
 0x14b   :  { %v447_v56 = vpack.c.bf16 %v1795_v53, %v1793_v52  ;;  %1344 = vmatmul.msk.bf16.vlgmr.msrb.gmra.mxu0 %vm509_vm2, %v489_v12 }
 0x14d   :  { %452 = vmatpush.bf16.msra.mxu3 %v447_v56 }
 0x14e   :  { %v421_v13 = vpop.f32.mrf.mxu2 }
 0x14f   :  { %v438_v14 = vadd.f32 %v421_v13, %v1756_v26 }
 0x151   :  { %453 = vmatpush.bf16.msra.mxu3 %v446_v60  ;;  %v1466_v60 = vld [vmem:[%s2086_s11 + $0x1] ss:$0 sm:$0xff] }
 0x155   :  { %454 = vmatpush.bf16.msra.mxu3 %v445_v0 }
 0x156   :  { %v423_v15 = vpop.f32.mrf.mxu2 }
 0x157   :  { %v439_v16 = vadd.f32 %v423_v15, %v1761_v27 }
 0x159   :  { %455 = vmatpush.bf16.msra.mxu3 %v444_v4  ;;  %v490_v17 = vpack.c.bf16 %v439_v16, %v438_v14 }
 0x15b   :  { %1345 = vmatmul.msk.bf16.gmra.mxu0 %vm509_vm2, %v490_v17 }
 0x15c   :  { %1332 = vmatmul.msk.bf16.vlgmr.msra.gmra.mxu3 %vm394_vm1, %v1774_v33 }
 0x15e   :  { %v426_v18 = vpop.f32.mrf.mxu2 }
 0x15f   :  { %v440_v21 = vadd.f32 %v426_v18, %v1744_v22 }
 0x166   :  { %v428_v24 = vpop.f32.mrf.mxu2 }
 0x167   :  { %v441_v25 = vadd.f32 %v428_v24, %v1749_v23 }
 0x169   :  { %v491_v28 = vpack.c.bf16 %v441_v25, %v440_v21 }
 0x16b   :  { %1346 = vmatmul.msk.bf16.gmra.mxu0 %vm509_vm2, %v491_v28 }
 0x16c   :  { %1333 = vmatmul.msk.bf16.gmra.mxu3 %vm394_vm1, %v1781_v39 }
 0x16e   :  { %v431_v29 = vpop.f32.mrf.mxu2 }
 0x16f   :  { %v442_v31 = vadd.f32 %v431_v29, %v1732_v19 }
 0x176   :  { %v433_v26 = vpop.f32.mrf.mxu2 }
 0x177   :  { %v443_v32 = vadd.f32 %v433_v26, %v1737_v20 }
 0x179   :  { %v492_v36 = vpack.c.bf16 %v443_v32, %v442_v31 }
 0x17b   :  { %1347 = vmatmul.msk.bf16.gmra.mxu0 %vm509_vm2, %v492_v36 }
 0x17c   :  { %1334 = vmatmul.msk.bf16.gmra.mxu3 %vm394_vm1, %v1788_v46 }
 0x18c   :  { %1335 = vmatmul.msk.bf16.gmra.mxu3 %vm394_vm1, %v1810_v3 }
 0x1c8   :  { %v531_v54 = vpop.f32.mrf.mxu0 }
 0x1d0   :  { %v533_v56 = vpop.f32.mrf.mxu0 }
 0x1df   :  { %v457_v30 = vpop.f32.mrf.mxu3 }
 0x1e0   :  { %v477_v34 = vadd.f32 %v457_v30, %v346_v2 }
 0x1e7   :  { %v459_v27 = vpop.f32.mrf.mxu3 }
 0x1e8   :  { %v478_v35 = vadd.f32 %v459_v27, %v347_v1 }
 0x1ea   :  { %v560_v37 = vpack.c.bf16 %v478_v35, %v477_v34 }
 0x1ec   :  { %1352 = vmatmul.msk.bf16.vlgmr.msra.gmra.mxu1 %vm572_vm3, %v560_v37 }
 0x1ef   :  { %v462_v22 = vpop.f32.mrf.mxu3 }
 0x1f0   :  { %v479_v38 = vadd.f32 %v462_v22, %v348_v63  ;;  %v1467_v63 = vld [vmem:[%s2086_s11 + $0x2] ss:$0 sm:$0xff] }
 0x1f7   :  { %v464_v23 = vpop.f32.mrf.mxu3 }
 0x1f8   :  { %v480_v40 = vadd.f32 %v464_v23, %v349_v61 }
 0x1fa   :  { %v561_v41 = vpack.c.bf16 %v480_v40, %v479_v38 }
 0x1fc   :  { %1353 = vmatmul.msk.bf16.gmra.mxu1 %vm572_vm3, %v561_v41 }
 0x1ff   :  { %v467_v19 = vpop.f32.mrf.mxu3 }
 0x200   :  { %v481_v20 = vadd.f32 %v467_v19, %v1803_v58  ;;  %v536_v58 = vpop.f32.mrf.mxu0 }
 0x207   :  { %v469_v42 = vpop.f32.mrf.mxu3 }
 0x208   :  { %v482_v43 = vadd.f32 %v469_v42, %v1799_v55  ;;  %v1435_v55 = vld [vmem:[%s2085_s10] sm:$0xff]  ;;  %v538_v5 = vpop.f32.mrf.mxu0 }
 0x209   :  { %688 = vmatpush.bf16.msra.mxu2 %v1435_v55 }
 0x20a   :  { %v562_v44 = vpack.c.bf16 %v482_v43, %v481_v20 }
 0x20c   :  { %1354 = vmatmul.msk.bf16.gmra.mxu1 %vm572_vm3, %v562_v44 }
 0x20f   :  { %v472_v45 = vpop.f32.mrf.mxu3 }
 0x210   :  { %v483_v48 = vadd.f32 %v472_v45, %v1793_v52  ;;  %v1465_v52 = vld [vmem:[%s2086_s11] ss:$0 sm:$0xff]  ;;  %v541_v13 = vpop.f32.mrf.mxu0 }
 0x211   :  { %v552_v57 = vadd.f32 %v1465_v52, %v531_v54  ;;  %v553_v61 = vadd.f32 %v1465_v52, %v533_v56  ;;  %v554_v10 = vadd.f32 %v1465_v52, %v536_v58  ;;  %v555_v14 = vadd.f32 %v1465_v52, %v538_v5 }
 0x212   :  { %v556_v31 = vadd.f32 %v1465_v52, %v541_v13 }
 0x217   :  { %v474_v47 = vpop.f32.mrf.mxu3 }
 0x218   :  { %v484_v49 = vadd.f32 %v474_v47, %v1795_v53  ;;  %v543_v29 = vpop.f32.mrf.mxu0 }
 0x219   :  { %v557_v27 = vadd.f32 %v1465_v52, %v543_v29  ;;  %v1437_v29 = vld [vmem:[%s2087_s12] sm:$0xff] }
 0x21a   :  { %v563_v50 = vpack.c.bf16 %v484_v49, %v483_v48 }
 0x21c   :  { %1355 = vmatmul.msk.bf16.gmra.mxu1 %vm572_vm3, %v563_v50 }
 0x220   :  { %v546_v37 = vpop.f32.mrf.mxu0 }
 0x221   :  { %v558_v42 = vadd.f32 %v1465_v52, %v546_v37 }
 0x228   :  { %v548_v44 = vpop.f32.mrf.mxu0 }
 0x229   :  { %v559_v45 = vadd.f32 %v1465_v52, %v548_v44  ;;  %v1468_v52 = vld [vmem:[%s2086_s11 + $0x3] ss:$0 sm:$0xff] }
 0x269   :  { %v594_v53 = vpop.f32.mrf.mxu1 }
 0x26a   :  { %v614_v59 = vadd.f32 %v594_v53, %v552_v57 }
 0x26c   :  { %v623_v62 = vmul.f32 %v1466_v60, %v614_v59 }
 0x26e   :  { %v632_v2 = vadd.f32 %v1467_v63, %v623_v62 }
 0x270   :  { %v640_v7 = vmax.f32 %v632_v2, 0.0 }
 0x271   :  { %v596_v0 = vpop.f32.mrf.mxu1 }
 0x272   :  { %v615_v1 = vadd.f32 %v596_v0, %v553_v61 }
 0x274   :  { %v624_v4 = vmul.f32 %v1466_v60, %v615_v1 }
 0x276   :  { %v633_v6 = vadd.f32 %v1467_v63, %v624_v4 }
 0x278   :  { %v641_v8 = vmax.f32 %v633_v6, 0.0 }
 0x279   :  { %v599_v9 = vpop.f32.mrf.mxu1 }
 0x27a   :  { %v648_v11 = vpack.c.bf16 %v641_v8, %v640_v7  ;;  %v616_v12 = vadd.f32 %v599_v9, %v554_v10 }
 0x27c   :  { %1364 = vmatmul.msk.bf16.vlgmr.msra.gmra.mxu2 %vm509_vm2, %v648_v11  ;;  %v625_v15 = vmul.f32 %v1466_v60, %v616_v12 }
 0x27e   :  { %v634_v18 = vadd.f32 %v1467_v63, %v625_v15 }
 0x280   :  { %v642_v25 = vmax.f32 %v634_v18, 0.0 }
 0x281   :  { %v601_v16 = vpop.f32.mrf.mxu1 }
 0x282   :  { %v617_v17 = vadd.f32 %v601_v16, %v555_v14 }
 0x284   :  { %v626_v21 = vmul.f32 %v1466_v60, %v617_v17 }
 0x286   :  { %v635_v24 = vadd.f32 %v1467_v63, %v626_v21 }
 0x288   :  { %v643_v28 = vmax.f32 %v635_v24, 0.0 }
 0x289   :  { %v604_v30 = vpop.f32.mrf.mxu1 }
 0x28a   :  { %v649_v26 = vpack.c.bf16 %v643_v28, %v642_v25  ;;  %v618_v32 = vadd.f32 %v604_v30, %v556_v31  ;;  %v1438_v28 = vld [vmem:[%s2087_s12 + $0x8] sm:$0xff] }
 0x28b   :  { %801 = vmatpush.bf16.msra.mxu0 %v1438_v28 }
 0x28c   :  { %1365 = vmatmul.msk.bf16.gmra.mxu2 %vm509_vm2, %v649_v26  ;;  %v627_v34 = vmul.f32 %v1466_v60, %v618_v32 }
 0x28e   :  { %v636_v22 = vadd.f32 %v1467_v63, %v627_v34 }
 0x28f   :  { %802 = vmatpush.bf16.msra.mxu0 %v1437_v29 }
 0x290   :  { %v644_v40 = vmax.f32 %v636_v22, 0.0 }
 0x291   :  { %v606_v35 = vpop.f32.mrf.mxu1 }
 0x292   :  { %v619_v36 = vadd.f32 %v606_v35, %v557_v27 }
 0x294   :  { %v628_v23 = vmul.f32 %v1466_v60, %v619_v36 }
 0x296   :  { %v637_v38 = vadd.f32 %v1467_v63, %v628_v23 }
 0x298   :  { %v645_v41 = vmax.f32 %v637_v38, 0.0 }
 0x299   :  { %v609_v19 = vpop.f32.mrf.mxu1 }
 0x29a   :  { %v650_v20 = vpack.c.bf16 %v645_v41, %v644_v40  ;;  %v620_v43 = vadd.f32 %v609_v19, %v558_v42 }
 0x29c   :  { %1366 = vmatmul.msk.bf16.gmra.mxu2 %vm509_vm2, %v650_v20  ;;  %v629_v47 = vmul.f32 %v1466_v60, %v620_v43 }
 0x29e   :  { %v638_v50 = vadd.f32 %v1467_v63, %v629_v47  ;;  %v1440_v47 = vld [vmem:[%s2088_s13 + $0x8] sm:$0xff] }
 0x29f   :  { %898 = vmatpush.bf16.msrb.mxu1 %v1440_v47 }
 0x2a0   :  { %v646_v55 = vmax.f32 %v638_v50, 0.0 }
 0x2a1   :  { %v611_v48 = vpop.f32.mrf.mxu1 }
 0x2a2   :  { %v621_v49 = vadd.f32 %v611_v48, %v559_v45  ;;  %v1439_v48 = vld [vmem:[%s2088_s13] sm:$0xff] }
 0x2a3   :  { %899 = vmatpush.bf16.msrb.mxu1 %v1439_v48 }
 0x2a4   :  { %v630_v51 = vmul.f32 %v1466_v60, %v621_v49  ;;  %v1469_v49 = vld [vmem:[%s2089_s14] ss:$0 sm:$0xff] }
 0x2a6   :  { %v639_v54 = vadd.f32 %v1467_v63, %v630_v51 }
 0x2a8   :  { %v647_v56 = vmax.f32 %v639_v54, 0.0  ;;  %v1470_v54 = vld [vmem:[%s2089_s14 + $0x1] ss:$0 sm:$0xff] }
 0x2aa   :  { %v651_v53 = vpack.c.bf16 %v647_v56, %v646_v55  ;;  %v1471_v56 = vld [vmem:[%s2089_s14 + $0x2] ss:$0 sm:$0xff] }
 0x2ac   :  { %1367 = vmatmul.msk.bf16.gmra.mxu2 %vm509_vm2, %v651_v53 }
 0x2ff   :  { %v690_v57 = vpop.f32.mrf.mxu2 }
 0x300   :  { %v691_v16 = vadd.f32 %v1468_v52, %v690_v57 }
 0x302   :  { %v1891_v24 = vmax.f32 %v691_v16, 0.0 }
 0x307   :  { %v692_v58 = vpop.f32.mrf.mxu2 }
 0x308   :  { %v693_v13 = vadd.f32 %v1468_v52, %v692_v58 }
 0x30a   :  { %v1887_v18 = vmax.f32 %v693_v13, 0.0 }
 0x30c   :  { %v718_v25 = vpack.c.bf16 %v1887_v18, %v1891_v24 }
 0x30f   :  { %v695_v59 = vpop.f32.mrf.mxu2 }
 0x310   :  { %v696_v11 = vadd.f32 %v1468_v52, %v695_v59 }
 0x312   :  { %v1885_v17 = vmax.f32 %v696_v11, 0.0 }
 0x317   :  { %v697_v61 = vpop.f32.mrf.mxu2 }
 0x318   :  { %v698_v8 = vadd.f32 %v1468_v52, %v697_v61 }
 0x31a   :  { %v1881_v14 = vmax.f32 %v698_v8, 0.0 }
 0x31c   :  { %v719_v21 = vpack.c.bf16 %v1881_v14, %v1885_v17 }
 0x31f   :  { %v700_v62 = vpop.f32.mrf.mxu2 }
 0x320   :  { %v701_v5 = vadd.f32 %v1468_v52, %v700_v62 }
 0x322   :  { %v1879_v12 = vmax.f32 %v701_v5, 0.0 }
 0x327   :  { %v702_v0 = vpop.f32.mrf.mxu2 }
 0x328   :  { %v703_v60 = vadd.f32 %v1468_v52, %v702_v0 }
 0x32a   :  { %v1875_v9 = vmax.f32 %v703_v60, 0.0 }
 0x32c   :  { %v720_v15 = vpack.c.bf16 %v1875_v9, %v1879_v12 }
 0x32f   :  { %v705_v1 = vpop.f32.mrf.mxu2 }
 0x330   :  { %v706_v2 = vadd.f32 %v1468_v52, %v705_v1 }
 0x332   :  { %v1871_v6 = vmax.f32 %v706_v2, 0.0 }
 0x337   :  { %v707_v4 = vpop.f32.mrf.mxu2 }
 0x338   :  { %v708_v63 = vadd.f32 %v1468_v52, %v707_v4 }
 0x33a   :  { %v1873_v7 = vmax.f32 %v708_v63, 0.0 }
 0x33c   :  { %v721_v10 = vpack.c.bf16 %v1873_v7, %v1871_v6 }
 0x33e   :  { %726 = vmatpush.bf16.msrb.mxu3 %v721_v10 }
 0x342   :  { %727 = vmatpush.bf16.msrb.mxu3 %v720_v15 }
 0x346   :  { %728 = vmatpush.bf16.msrb.mxu3 %v719_v21 }
 0x34a   :  { %729 = vmatpush.bf16.msrb.mxu3 %v718_v25 }
 0x34d   :  { %1368 = vmatmul.msk.bf16.vlgmr.msrb.gmra.mxu3 %vm394_vm1, %v1774_v33 }
 0x35d   :  { %1369 = vmatmul.msk.bf16.gmra.mxu3 %vm394_vm1, %v1781_v39 }
 0x36d   :  { %1370 = vmatmul.msk.bf16.gmra.mxu3 %vm394_vm1, %v1788_v46 }
 0x37d   :  { %1371 = vmatmul.msk.bf16.gmra.mxu3 %vm394_vm1, %v1810_v3 }
 0x3d0   :  { %v731_v30 = vpop.f32.mrf.mxu3 }
 0x3d1   :  { %v751_v26 = vadd.f32 %v731_v30, %v1891_v24 }
 0x3d8   :  { %v733_v31 = vpop.f32.mrf.mxu3 }
 0x3d9   :  { %v752_v32 = vadd.f32 %v733_v31, %v1887_v18 }
 0x3db   :  { %v763_v27 = vpack.c.bf16 %v752_v32, %v751_v26 }
 0x3dd   :  { %1380 = vmatmul.msk.bf16.vlgmr.msra.gmra.mxu0 %vm509_vm2, %v763_v27 }
 0x3e0   :  { %v736_v34 = vpop.f32.mrf.mxu3 }
 0x3e1   :  { %v753_v36 = vadd.f32 %v736_v34, %v1885_v17 }
 0x3e8   :  { %v738_v35 = vpop.f32.mrf.mxu3 }
 0x3e9   :  { %v754_v37 = vadd.f32 %v738_v35, %v1881_v14 }
 0x3eb   :  { %v764_v22 = vpack.c.bf16 %v754_v37, %v753_v36 }
 0x3ed   :  { %1381 = vmatmul.msk.bf16.gmra.mxu0 %vm509_vm2, %v764_v22 }
 0x3f0   :  { %v741_v23 = vpop.f32.mrf.mxu3 }
 0x3f1   :  { %v755_v40 = vadd.f32 %v741_v23, %v1879_v12 }
 0x3f8   :  { %v743_v38 = vpop.f32.mrf.mxu3 }
 0x3f9   :  { %v756_v41 = vadd.f32 %v743_v38, %v1875_v9 }
 0x3fb   :  { %v765_v19 = vpack.c.bf16 %v756_v41, %v755_v40 }
 0x3fd   :  { %1382 = vmatmul.msk.bf16.gmra.mxu0 %vm509_vm2, %v765_v19 }
 0x400   :  { %v746_v42 = vpop.f32.mrf.mxu3 }
 0x401   :  { %v757_v43 = vadd.f32 %v746_v42, %v1871_v6 }
 0x408   :  { %v748_v20 = vpop.f32.mrf.mxu3 }
 0x409   :  { %v758_v44 = vadd.f32 %v748_v20, %v1873_v7 }
 0x40b   :  { %v766_v45 = vpack.c.bf16 %v758_v44, %v757_v43 }
 0x40d   :  { %1383 = vmatmul.msk.bf16.gmra.mxu0 %vm509_vm2, %v766_v45 }
 0x45a   :  { %v804_v50 = vpop.f32.mrf.mxu0 }
 0x45b   :  { %v825_v51 = vadd.f32 %v1469_v49, %v804_v50 }
 0x45d   :  { %v834_v55 = vmul.f32 %v1470_v54, %v825_v51 }
 0x45f   :  { %v843_v58 = vadd.f32 %v1471_v56, %v834_v55  ;;  %v1472_v55 = vld [vmem:[%s2089_s14 + $0x3] ss:$0 sm:$0xff] }
 0x461   :  { %v851_v62 = vmax.f32 %v843_v58, 0.0 }
 0x462   :  { %v806_v53 = vpop.f32.mrf.mxu0 }
 0x463   :  { %v826_v57 = vadd.f32 %v1469_v49, %v806_v53 }
 0x465   :  { %v835_v59 = vmul.f32 %v1470_v54, %v826_v57 }
 0x467   :  { %v844_v61 = vadd.f32 %v1471_v56, %v835_v59 }
 0x469   :  { %v852_v0 = vmax.f32 %v844_v61, 0.0 }
 0x46a   :  { %v809_v1 = vpop.f32.mrf.mxu0 }
 0x46b   :  { %v859_v52 = vpack.c.bf16 %v852_v0, %v851_v62  ;;  %v827_v2 = vadd.f32 %v1469_v49, %v809_v1 }
 0x46d   :  { %1392 = vmatmul.msk.bf16.vlgmr.msrb.gmra.mxu1 %vm509_vm2, %v859_v52  ;;  %v836_v4 = vmul.f32 %v1470_v54, %v827_v2 }
 0x46f   :  { %v845_v5 = vadd.f32 %v1471_v56, %v836_v4 }
 0x471   :  { %v853_v11 = vmax.f32 %v845_v5, 0.0 }
 0x472   :  { %v811_v60 = vpop.f32.mrf.mxu0 }
 0x473   :  { %v828_v63 = vadd.f32 %v1469_v49, %v811_v60 }
 0x475   :  { %v837_v8 = vmul.f32 %v1470_v54, %v828_v63 }
 0x477   :  { %v846_v10 = vadd.f32 %v1471_v56, %v837_v8 }
 0x479   :  { %v854_v13 = vmax.f32 %v846_v10, 0.0 }
 0x47a   :  { %v814_v15 = vpop.f32.mrf.mxu0 }
 0x47b   :  { %v860_v16 = vpack.c.bf16 %v854_v13, %v853_v11  ;;  %v829_v21 = vadd.f32 %v1469_v49, %v814_v15 }
 0x47d   :  { %1393 = vmatmul.msk.bf16.gmra.mxu1 %vm509_vm2, %v860_v16  ;;  %v838_v25 = vmul.f32 %v1470_v54, %v829_v21 }
 0x47f   :  { %v847_v30 = vadd.f32 %v1471_v56, %v838_v25 }
 0x481   :  { %v855_v32 = vmax.f32 %v847_v30, 0.0 }
 0x482   :  { %v816_v28 = vpop.f32.mrf.mxu0 }
 0x483   :  { %v830_v29 = vadd.f32 %v1469_v49, %v816_v28 }
 0x485   :  { %v839_v31 = vmul.f32 %v1470_v54, %v830_v29 }
 0x487   :  { %v848_v26 = vadd.f32 %v1471_v56, %v839_v31 }
 0x489   :  { %v856_v27 = vmax.f32 %v848_v26, 0.0  ;;  %v1442_v26 = vld [vmem:[%s2090_s15 + $0x8] sm:$0xff] }
 0x48a   :  { %v819_v34 = vpop.f32.mrf.mxu0  ;;  %1020 = vmatpush.bf16.msra.mxu3 %v1442_v26 }
 0x48b   :  { %v861_v35 = vpack.c.bf16 %v856_v27, %v855_v32  ;;  %v831_v36 = vadd.f32 %v1469_v49, %v819_v34  ;;  %v1441_v32 = vld [vmem:[%s2090_s15] sm:$0xff] }
 0x48d   :  { %1394 = vmatmul.msk.bf16.gmra.mxu1 %vm509_vm2, %v861_v35  ;;  %v840_v37 = vmul.f32 %v1470_v54, %v831_v36 }
 0x48e   :  { %1021 = vmatpush.bf16.msra.mxu3 %v1441_v32 }
 0x48f   :  { %v849_v38 = vadd.f32 %v1471_v56, %v840_v37 }
 0x491   :  { %v857_v19 = vmax.f32 %v849_v38, 0.0 }
 0x492   :  { %v821_v22 = vpop.f32.mrf.mxu0 }
 0x493   :  { %v832_v23 = vadd.f32 %v1469_v49, %v821_v22 }
 0x495   :  { %v841_v40 = vmul.f32 %v1470_v54, %v832_v23 }
 0x497   :  { %v850_v41 = vadd.f32 %v1471_v56, %v841_v40 }
 0x499   :  { %v858_v42 = vmax.f32 %v850_v41, 0.0 }
 0x49b   :  { %v862_v20 = vpack.c.bf16 %v858_v42, %v857_v19 }
 0x49d   :  { %1395 = vmatmul.msk.bf16.gmra.mxu1 %vm509_vm2, %v862_v20 }
 0x4ea   :  { %v901_v43 = vpop.f32.mrf.mxu1 }
 0x4eb   :  { %v902_v8 = vadd.f32 %v1472_v55, %v901_v43 }
 0x4ed   :  { %v921_v21 = vmax.f32 %v902_v8, 0.0 }
 0x4ef   :  { %v1971_v30 = vadd.f32 %v921_v21, %v1891_v24 }
 0x4f2   :  { %v903_v44 = vpop.f32.mrf.mxu1 }
 0x4f3   :  { %v904_v4 = vadd.f32 %v1472_v55, %v903_v44 }
 0x4f5   :  { %v922_v13 = vmax.f32 %v904_v4, 0.0 }
 0x4f7   :  { %v1966_v28 = vadd.f32 %v922_v13, %v1887_v18 }
 0x4f9   :  { %v937_v31 = vpack.c.bf16 %v1966_v28, %v1971_v30 }
 0x4fa   :  { %v906_v45 = vpop.f32.mrf.mxu1 }
 0x4fb   :  { %v907_v0 = vadd.f32 %v1472_v55, %v906_v45 }
 0x4fd   :  { %v923_v10 = vmax.f32 %v907_v0, 0.0 }
 0x4ff   :  { %v1963_v25 = vadd.f32 %v923_v10, %v1885_v17 }
 0x502   :  { %v908_v47 = vpop.f32.mrf.mxu1 }
 0x503   :  { %v909_v59 = vadd.f32 %v1472_v55, %v908_v47  ;;  %v1444_v47 = vld [vmem:[%s2091_s16 + $0x8] sm:$0xff] }
 0x504   :  { %1117 = vmatpush.bf16.msrb.mxu0 %v1444_v47 }
 0x505   :  { %v924_v60 = vmax.f32 %v909_v59, 0.0 }
 0x507   :  { %v1958_v15 = vadd.f32 %v924_v60, %v1881_v14 }
 0x509   :  { %v938_v29 = vpack.c.bf16 %v1958_v15, %v1963_v25 }
 0x50a   :  { %v911_v48 = vpop.f32.mrf.mxu1 }
 0x50b   :  { %v912_v56 = vadd.f32 %v1472_v55, %v911_v48  ;;  %v1443_v48 = vld [vmem:[%s2091_s16] sm:$0xff] }
 0x50c   :  { %1118 = vmatpush.bf16.msrb.mxu0 %v1443_v48 }
 0x50d   :  { %v925_v1 = vmax.f32 %v912_v56, 0.0 }
 0x50f   :  { %v1955_v11 = vadd.f32 %v925_v1, %v1879_v12 }
 0x512   :  { %v913_v50 = vpop.f32.mrf.mxu1 }
 0x513   :  { %v914_v53 = vadd.f32 %v1472_v55, %v913_v50  ;;  %v1473_v50 = vld [vmem:[%s2092_s17] ss:$0 sm:$0xff] }
 0x515   :  { %v926_v61 = vmax.f32 %v914_v53, 0.0 }
 0x517   :  { %v1950_v63 = vadd.f32 %v926_v61, %v1875_v9 }
 0x519   :  { %v939_v16 = vpack.c.bf16 %v1950_v63, %v1955_v11 }
 0x51a   :  { %v916_v51 = vpop.f32.mrf.mxu1 }
 0x51b   :  { %v917_v49 = vadd.f32 %v1472_v55, %v916_v51 }
 0x51d   :  { %v927_v57 = vmax.f32 %v917_v49, 0.0  ;;  %v1474_v49 = vld [vmem:[%s2092_s17 + $0x1] ss:$0 sm:$0xff] }
 0x51f   :  { %v1944_v52 = vadd.f32 %v927_v57, %v1871_v6 }
 0x522   :  { %v918_v54 = vpop.f32.mrf.mxu1 }
 0x523   :  { %v919_v58 = vadd.f32 %v1472_v55, %v918_v54  ;;  %v1475_v54 = vld [vmem:[%s2092_s17 + $0x2] ss:$0 sm:$0xff] }
 0x525   :  { %v928_v62 = vmax.f32 %v919_v58, 0.0 }
 0x527   :  { %v1947_v2 = vadd.f32 %v928_v62, %v1873_v7 }
 0x529   :  { %v940_v5 = vpack.c.bf16 %v1947_v2, %v1944_v52 }
 0x52b   :  { %945 = vmatpush.bf16.msrb.mxu2 %v940_v5 }
 0x52f   :  { %946 = vmatpush.bf16.msrb.mxu2 %v939_v16 }
 0x533   :  { %947 = vmatpush.bf16.msrb.mxu2 %v938_v29 }
 0x537   :  { %948 = vmatpush.bf16.msrb.mxu2 %v937_v31 }
 0x53a   :  { %1396 = vmatmul.msk.bf16.vlgmr.msrb.gmra.mxu2 %vm394_vm1, %v1774_v33 }
 0x54a   :  { %1397 = vmatmul.msk.bf16.gmra.mxu2 %vm394_vm1, %v1781_v39 }
 0x55a   :  { %1398 = vmatmul.msk.bf16.gmra.mxu2 %vm394_vm1, %v1788_v46 }
 0x56a   :  { %1399 = vmatmul.msk.bf16.gmra.mxu2 %vm394_vm1, %v1810_v3 }
 0x5bd   :  { %v950_v33 = vpop.f32.mrf.mxu2 }
 0x5be   :  { %v970_v39 = vadd.f32 %v950_v33, %v1971_v30 }
 0x5c5   :  { %v952_v27 = vpop.f32.mrf.mxu2 }
 0x5c6   :  { %v971_v34 = vadd.f32 %v952_v27, %v1966_v28 }
 0x5c8   :  { %v982_v35 = vpack.c.bf16 %v971_v34, %v970_v39 }
 0x5ca   :  { %1408 = vmatmul.msk.bf16.vlgmr.msra.gmra.mxu3 %vm509_vm2, %v982_v35 }
 0x5cd   :  { %v955_v36 = vpop.f32.mrf.mxu2 }
 0x5ce   :  { %v972_v46 = vadd.f32 %v955_v36, %v1963_v25 }
 0x5d5   :  { %v957_v37 = vpop.f32.mrf.mxu2 }
 0x5d6   :  { %v973_v3 = vadd.f32 %v957_v37, %v1958_v15 }
 0x5d8   :  { %v983_v22 = vpack.c.bf16 %v973_v3, %v972_v46 }
 0x5da   :  { %1409 = vmatmul.msk.bf16.gmra.mxu3 %vm509_vm2, %v983_v22 }
 0x5dd   :  { %v960_v23 = vpop.f32.mrf.mxu2 }
 0x5de   :  { %v974_v40 = vadd.f32 %v960_v23, %v1955_v11 }
 0x5e5   :  { %v962_v38 = vpop.f32.mrf.mxu2 }
 0x5e6   :  { %v975_v41 = vadd.f32 %v962_v38, %v1950_v63 }
 0x5e8   :  { %v984_v19 = vpack.c.bf16 %v975_v41, %v974_v40 }
 0x5ea   :  { %1410 = vmatmul.msk.bf16.gmra.mxu3 %vm509_vm2, %v984_v19 }
 0x5ed   :  { %v965_v42 = vpop.f32.mrf.mxu2 }
 0x5ee   :  { %v976_v43 = vadd.f32 %v965_v42, %v1944_v52 }
 0x5f5   :  { %v967_v20 = vpop.f32.mrf.mxu2 }
 0x5f6   :  { %v977_v44 = vadd.f32 %v967_v20, %v1947_v2 }
 0x5f8   :  { %v985_v45 = vpack.c.bf16 %v977_v44, %v976_v43 }
 0x5fa   :  { %1411 = vmatmul.msk.bf16.gmra.mxu3 %vm509_vm2, %v985_v45 }
 0x64d   :  { %v1023_v51 = vpop.f32.mrf.mxu3 }
 0x64e   :  { %v1044_v55 = vadd.f32 %v1473_v50, %v1023_v51 }
 0x650   :  { %v1053_v53 = vmul.f32 %v1474_v49, %v1044_v55 }
 0x652   :  { %v1062_v58 = vadd.f32 %v1475_v54, %v1053_v53  ;;  %v1157_v53 = vlaneseq }
 0x654   :  { %v1070_v62 = vmax.f32 %v1062_v58, 0.0 }
 0x655   :  { %v1025_v56 = vpop.f32.mrf.mxu3 }
 0x656   :  { %v1045_v57 = vadd.f32 %v1473_v50, %v1025_v56  ;;  %v1158_v56 = vshrl.u32 %v1157_v53, 7 }
 0x658   :  { %v1054_v59 = vmul.f32 %v1474_v49, %v1045_v57  ;;  %v1477_v57 = vld [vmem:[%s2117_s4] ss:$0 sm:$0xff] }
 0x659   :  { %vm1160_vm4 = vcmp.eq.s32.totalorder %v1477_v57, %v1158_v56  ;;  %v1479_v57 = vld [vmem:[%s2096_s21] ss:$0 sm:$0xff] }
 0x65a   :  { %v1063_v61 = vadd.f32 %v1475_v54, %v1054_v59 }
 0x65c   :  { %v1071_v0 = vmax.f32 %v1063_v61, 0.0 }
 0x65d   :  { %v1028_v1 = vpop.f32.mrf.mxu3 }
 0x65e   :  { %v1078_v4 = vpack.c.bf16 %v1071_v0, %v1070_v62  ;;  %v1046_v60 = vadd.f32 %v1473_v50, %v1028_v1  ;;  %v1476_v0 = vld [vmem:[%s2092_s17 + $0x3] ss:$0 sm:$0xff] }
 0x660   :  { %1420 = vmatmul.msk.bf16.vlgmr.msrb.gmra.mxu0 %vm509_vm2, %v1078_v4  ;;  %v1055_v5 = vmul.f32 %v1474_v49, %v1046_v60 }
 0x662   :  { %v1064_v13 = vadd.f32 %v1475_v54, %v1055_v5 }
 0x664   :  { %v1072_v29 = vmax.f32 %v1064_v13, 0.0 }
 0x665   :  { %v1030_v8 = vpop.f32.mrf.mxu3 }
 0x666   :  { %v1047_v10 = vadd.f32 %v1473_v50, %v1030_v8 }
 0x668   :  { %v1056_v16 = vmul.f32 %v1474_v49, %v1047_v10 }
 0x66a   :  { %v1065_v21 = vadd.f32 %v1475_v54, %v1056_v16 }
 0x66c   :  { %v1073_v31 = vmax.f32 %v1065_v21, 0.0 }
 0x66d   :  { %v1033_v26 = vpop.f32.mrf.mxu3 }
 0x66e   :  { %v1079_v32 = vpack.c.bf16 %v1073_v31, %v1072_v29  ;;  %v1048_v33 = vadd.f32 %v1473_v50, %v1033_v26 }
 0x670   :  { %1421 = vmatmul.msk.bf16.gmra.mxu0 %vm509_vm2, %v1079_v32  ;;  %v1057_v27 = vmul.f32 %v1474_v49, %v1048_v33 }
 0x672   :  { %v1066_v35 = vadd.f32 %v1475_v54, %v1057_v27 }
 0x674   :  { %v1074_v46 = vmax.f32 %v1066_v35, 0.0 }
 0x675   :  { %v1035_v39 = vpop.f32.mrf.mxu3 }
 0x676   :  { %v1049_v34 = vadd.f32 %v1473_v50, %v1035_v39 }
 0x678   :  { %v1058_v36 = vmul.f32 %v1474_v49, %v1049_v34 }
 0x67a   :  { %v1067_v37 = vadd.f32 %v1475_v54, %v1058_v36 }
 0x67c   :  { %v1075_v3 = vmax.f32 %v1067_v37, 0.0 }
 0x67d   :  { %v1038_v22 = vpop.f32.mrf.mxu3 }
 0x67e   :  { %v1080_v23 = vpack.c.bf16 %v1075_v3, %v1074_v46  ;;  %v1050_v38 = vadd.f32 %v1473_v50, %v1038_v22 }
 0x680   :  { %1422 = vmatmul.msk.bf16.gmra.mxu0 %vm509_vm2, %v1080_v23  ;;  %v1059_v40 = vmul.f32 %v1474_v49, %v1050_v38 }
 0x682   :  { %v1068_v42 = vadd.f32 %v1475_v54, %v1059_v40 }
 0x684   :  { %v1076_v44 = vmax.f32 %v1068_v42, 0.0 }
 0x685   :  { %v1040_v41 = vpop.f32.mrf.mxu3 }
 0x686   :  { %v1051_v19 = vadd.f32 %v1473_v50, %v1040_v41  ;;  %v1514_v50 = vmov 0.0  }
 0x687   :  { %v1424_v59 = vsel %vm1160_vm4, 1.0, %v1514_v50 }
 0x688   :  { %v1060_v20 = vmul.f32 %v1474_v49, %v1051_v19  ;;  %v1164_v49 = vsel %vm1163_vm5, %v1424_v59, 0.0  ;;  %v1168_v46 = vpack.c.bf16 %v1424_v59, %v1424_v59 }
 0x689   :  { %1165 = vadd.xlane.f32.xlu1 %v1164_v49 }
 0x68a   :  { %v1069_v43 = vadd.f32 %v1475_v54, %v1060_v20 }
 0x68c   :  { %v1077_v45 = vmax.f32 %v1069_v43, 0.0 }
 0x68e   :  { %v1081_v47 = vpack.c.bf16 %v1077_v45, %v1076_v44 }
 0x690   :  { %1423 = vmatmul.msk.bf16.gmra.mxu0 %vm509_vm2, %v1081_v47 }
 0x6dd   :  { %v1120_v48 = vpop.f32.mrf.mxu0 }
 0x6e5   :  { %v1122_v51 = vpop.f32.mrf.mxu0 }
 0x6e6   :  { %v1123_v33 = vadd.f32 %v1476_v0, %v1122_v51  ;;  %v1478_v51 = vld [vmem:[%s2094_s19] ss:$0 sm:$0xff]  ;;  %s1515_s19 = smov [#allocation2]  }
 0x6ed   :  { %v1125_v55 = vpop.f32.mrf.mxu0 }
 0x6ee   :  { %v1126_v29 = vadd.f32 %v1476_v0, %v1125_v55 }
 0x6f0   :  { %v1142_v35 = vadd.f32 %v1126_v29, %v1963_v25 }
 0x6f5   :  { %v1127_v58 = vpop.f32.mrf.mxu0 }
 0x6f6   :  { %v1128_v13 = vadd.f32 %v1476_v0, %v1127_v58 }
 0x6f8   :  { %v1143_v27 = vadd.f32 %v1128_v13, %v1958_v15 }
 0x6fd   :  { %v1130_v54 = vpop.f32.mrf.mxu0 }
 0x6fe   :  { %v1131_v5 = vadd.f32 %v1476_v0, %v1130_v54 }
 0x700   :  { %v1144_v31 = vadd.f32 %v1131_v5, %v1955_v11  ;;  %v1151_v11 = vadd.f32 %v1143_v27, %v1881_v14  ;;  %v1206_v14 = vld [vmem:[%s2093_s18 + $0x10] sm:$0xff] }
 0x705   :  { %v1132_v61 = vpop.f32.mrf.mxu0 }
 0x706   :  { %v1133_v4 = vadd.f32 %v1476_v0, %v1132_v61 }
 0x708   :  { %v1145_v16 = vadd.f32 %v1133_v4, %v1950_v63  ;;  %v1152_v63 = vadd.f32 %v1144_v31, %v1879_v12  ;;  %v1207_v12 = vld [vmem:[%s2093_s18 + $0x18] sm:$0xff] }
 0x709   :  { %1227 = vmatpush.msra.mxu2 %v1207_v12 }
 0x70a   :  { %v1153_v39 = vadd.f32 %v1145_v16, %v1875_v9 }
 0x70b   :  { %1228 = vmatpush.msra.mxu2 %v1206_v14 }
 0x70c   :  { %v1171_v36 = vpack.c.bf16 %v1153_v39, %v1152_v63 }
 0x70d   :  { %v1135_v62 = vpop.f32.mrf.mxu0 }
 0x70e   :  { %v1136_v1 = vadd.f32 %v1476_v0, %v1135_v62 }
 0x710   :  { %v1146_v8 = vadd.f32 %v1136_v1, %v1944_v52  ;;  %v1121_v52 = vadd.f32 %v1476_v0, %v1120_v48  ;;  %v1236_v48 = vld [vmem:[%s2095_s20] sm:$0xff] }
 0x712   :  { %v1154_v26 = vadd.f32 %v1146_v8, %v1871_v6  ;;  %v1140_v6 = vadd.f32 %v1121_v52, %v1971_v30  ;;  %v1237_v30 = vld [vmem:[%s2095_s20 + $0x8] sm:$0xff]  ;;  %s1285_s20 = sshll.u32 %s1515_s19, 4  ;;  %s1286_s20 = int_to_ptr.vmem [resolvable:$true] %s1285_s20 }
 0x713   :  { %1259 = vmatpush.msrb.mxu3 %v1237_v30 }
 0x714   :  { %v1148_v37 = vadd.f32 %v1140_v6, %v1891_v24 }
 0x715   :  { %v1137_v60 = vpop.f32.mrf.mxu0  ;;  %1260 = vmatpush.msrb.mxu3 %v1236_v48 }
 0x716   :  { %v1138_v10 = vadd.f32 %v1476_v0, %v1137_v60 }
 0x718   :  { %v1147_v21 = vadd.f32 %v1138_v10, %v1947_v2  ;;  %v1141_v2 = vadd.f32 %v1123_v33, %v1966_v28  ;;  %v1204_v28 = vld [vmem:[%s2093_s18] sm:$0xff] }
 0x71a   :  { %v1155_v32 = vadd.f32 %v1147_v21, %v1873_v7  ;;  %v1150_v7 = vadd.f32 %v1142_v35, %v1885_v17  ;;  %v1149_v15 = vadd.f32 %v1141_v2, %v1887_v18  ;;  %v1166_v17 = vpop.xlane.xlu1 %1165  ;;  %v1205_v18 = vld [vmem:[%s2093_s18 + $0x8] sm:$0xff] }
 0x71b   :  { %v1167_v24 = vmax.f32 %v1166_v17, 1.0  ;;  %1229 = vmatpush.msra.mxu2 %v1205_v18 }
 0x71c   :  { %v1172_v34 = vpack.c.bf16 %v1155_v32, %v1154_v26  ;;  %v1170_v9 = vpack.c.bf16 %v1151_v11, %v1150_v7  ;;  %v1169_v25 = vpack.c.bf16 %v1149_v15, %v1148_v37 }
 0x71d   :  { %1230 = vmatpush.msra.mxu2 %v1204_v28  ;;  %1480 = vrcp.f32 %v1167_v24  ;;  %vm1194_vm6 = vweird.f32 %v1167_v24  ;;  %v1200_v40 = vand.u32 2147483648, %v1167_v24  ;;  %v1198_v19 = vand.u32 2147483647, %v1167_v24 }
 0x71e   :  { %1180 = vmatpush.bf16.msra.mxu1 %v1172_v34 }
 0x71f   :  { %v1201_v42 = vor.u32 1.1754944e-38, %v1200_v40  ;;  %vm1199_vm9 = vcmp.eq.f32.partialorder %v1198_v19, 8.507059e+37 }
 0x722   :  { %1181 = vmatpush.bf16.msra.mxu1 %v1171_v36 }
 0x723   :  { %v1481_v3 = vpop.eup %1480 }
 0x724   :  { %v1190_v22 = vmul.f32 %v1481_v3, %v1167_v24  ;;  %vm1195_vm7 = vweird.f32 %v1481_v3 }
 0x725   :  { %vm1196_vm8 = vmor %vm1194_vm6, %vm1195_vm7 }
 0x726   :  { %1182 = vmatpush.bf16.msra.mxu1 %v1170_v9  ;;  %v1191_v23 = vsub.f32 1.0, %v1190_v22 }
 0x728   :  { %v1192_v38 = vmul.f32 %v1481_v3, %v1191_v23 }
 0x72a   :  { %1183 = vmatpush.bf16.msra.mxu1 %v1169_v25  ;;  %v1193_v41 = vadd.f32 %v1481_v3, %v1192_v38 }
 0x72c   :  { %v1197_v20 = vsel %vm1196_vm8, %v1481_v3, %v1193_v41 }
 0x72d   :  { %1425 = vmatmul.msk.bf16.vlgmr.msra.gmra.mxu1 %vm394_vm1, %v1168_v46  ;;  %v1202_v44 = vsel %vm1199_vm9, %v1201_v42, %v1197_v20 }
 0x7aa   :  { %v1185_v43 = vpop.f32.mrf.mxu1 }
 0x7ab   :  { %v1203_v45 = vmul.f32 %v1202_v44, %v1185_v43 }
 0x7ad   :  { %1426 = vmatmul.msk.f32.vlgmr.msra.gmra.mxu2 %vm509_vm2, %v1203_v45 }
 0x7b2   :  { %v1187_v47 = vpop.f32.mrf.mxu1 }
 0x830   :  { %v1232_v55 = vpop.f32.mrf.mxu2 }
 0x831   :  { %v1233_v53 = vadd.f32 %v1478_v51, %v1232_v55 }
 0x833   :  { %v1235_v56 = vmax.f32 %v1233_v53, 0.0 }
 0x835   :  { %1427 = vmatmul.msk.f32.vlgmr.msrb.gmra.mxu3 %vm572_vm3, %v1235_v56 }
 0x8b8   :  { %v1262_v58 = vpop.f32.mrf.mxu3 }
 0x8b9   :  { %v1263_v50 = vadd.f32 %v1479_v57, %v1262_v58 }
 0x8bb   :  { %v1266_v59 = vsel %vm1265_vm10, %v1263_v50, -inf }
 0x8bc   :  { %1267 = vmax.xlane.f32.xlu2 %v1266_v59 }
 0x92f   :  { %v1268_v49 = vpop.xlane.xlu2 %1267 }
 0x930   :  { %v1269_v54 = vsub.f32 %v1263_v50, %v1268_v49 }
 0x932   :  { %v1270_v61 = vmul.f32 1.442695, %v1269_v54 }
 0x934   :  { %1482 = vpow2.f32 %v1270_v61 }
 0x93a   :  { %v1483_v62 = vpop.eup %1482 }
 0x93b   :  { %v1272_v0 = vsel %vm1265_vm10, %v1483_v62, 0.0 }
 0x93c   :  { %1273 = vadd.xlane.f32.xlu0 %v1272_v0 }
 0x9af   :  { %v1274_v1 = vpop.xlane.xlu0 %1273 }
 0x9b0   :  { %1484 = vlog2.f32 %v1274_v1 }
 0x9b6   :  { %v1485_v4 = vpop.eup %1484 }
 0x9b7   :  { %v1276_v60 = vmul.f32 0.6931472, %v1485_v4 }
 0x9b9   :  { %v1277_v5 = vadd.f32 %v1276_v60, %v1268_v49 }
 0x9bb   :  { %v1278_v8 = vsub.f32 %v1263_v50, %v1277_v5 }
 0x9bd   :  { %1279 = vst.msk [vmem:[#allocation2] sm:$0xf] %vm1265_vm10, %v1278_v8 }
 0x9be   :  { %1290 = dma.vmem_to_hbm [thread:$0]  %s1286_s20, 64, %s1288_s2, [#allocation3]  }
 0x9bf   :  { %1510 = dma.done.wait [#allocation3], 64  }
 0x9c0   :  { %1511 = vsyncadd [#allocation3], 4294967232 }
 0x9c1   :  { %1295 = vsyncpa [#allocation3], 1 }

</bundles_post_ra>
